<compile_context>
chip_gen: v5e
topology: v5e:2x2
jax: 0.10.0
libtpu: 0.0.40
codegen_flags: <defaults>
</compile_context>

<pallas_src>
import functools

import jax
import jax.numpy as jnp
from jax.experimental import pallas as pl
from jax.experimental.pallas import tpu as pltpu


def _vq_kernel(x_ref, e_ref, e2_ref, q_ref, idx_ref, sse_ref, *, n_valid: int):
    i = pl.program_id(0)
    tn, d = x_ref.shape
    k_pad = e_ref.shape[0]

    x = x_ref[...]                                   # (TN, D), native dtype
    e = e_ref[...]                                   # (K_pad, D), resident

    # Distance proxy (argmin-equivalent): 0.5*||e||^2 - x.e
    # (||x||^2 dropped - constant per row; factor 2 folded into the half-norms.
    #  Padded codebook entries carry +inf half-norm so they never win.)
    xe = jax.lax.dot_general(
        x, e, dimension_numbers=(((1,), (1,)), ((), ())),
        preferred_element_type=jnp.float32)          # (TN, K_pad) on the MXU
    dist = e2_ref[...] - xe                          # (1,K) - (TN,K) broadcast, f32

    # First-occurrence argmin over the codebook axis (matches torch.argmin ties).
    iota_k = jax.lax.broadcasted_iota(jnp.int32, (tn, k_pad), 1)
    dmin = jnp.min(dist, axis=1, keepdims=True)                                # (TN, 1)
    idx = jnp.min(jnp.where(dist <= dmin, iota_k, jnp.int32(k_pad)), axis=1)   # (TN,)
    idx_ref[...] = idx[None, :].astype(jnp.int32)                              # (1, TN) lane-dense

    # Codebook gather via one-hot matmul (MXU-friendly; exact since one-hot is 0/1).
    onehot = (iota_k == idx[:, None]).astype(e.dtype)                          # (TN, K_pad)
    q = jnp.dot(onehot, e, preferred_element_type=jnp.float32)                 # (TN, D) f32
    q_ref[...] = q.astype(q_ref.dtype)

    # Per-tile partial SSE; rows >= n_valid (pad / garbage tail) masked out.
    # Final mean and (1 + commitment_cost) scaling happen in the wrapper.
    row_ids = i * tn + jax.lax.broadcasted_iota(jnp.int32, (tn, 1), 0)         # (TN, 1)
    diff = jnp.where(row_ids < n_valid, q - x.astype(jnp.float32), 0.0)
    sse = jnp.sum(diff * diff)
    sse_ref[...] = jnp.broadcast_to(sse, sse_ref.shape).astype(jnp.float32)


def _vmem_limit_bytes():
    """Generation-aware VMEM budget: ~75% of physical, capped at 100 MiB."""
    try:
        cap = pltpu.get_tpu_info().vmem_capacity_bytes
    except Exception:
        cap = 64 * 1024 * 1024
    return int(min(100 * 1024 * 1024, max(32 * 1024 * 1024, cap * 3 // 4)))


def _make_call(kernel, n_rows_out, n_tiles, tile, d, k_pad, out_dtype,
               single_buffer_codebook):
    # Grid-invariant operands: single buffer (double-buffering a constant block
    # only duplicates it in VMEM).
    resident_kwargs = (
        dict(pipeline_mode=pl.Buffered(1)) if single_buffer_codebook else {})
    grid_spec = pltpu.PrefetchScalarGridSpec(
        num_scalar_prefetch=0,
        grid=(n_tiles,),
        in_specs=[
            pl.BlockSpec((tile, d), lambda i: (i, 0)),                      # x tile
            pl.BlockSpec((k_pad, d), lambda i: (0, 0), **resident_kwargs),  # E (resident)
            pl.BlockSpec((1, k_pad), lambda i: (0, 0), **resident_kwargs),  # 0.5*||E||^2
        ],
        out_specs=[
            pl.BlockSpec((tile, d), lambda i: (i, 0)),    # quantized
            pl.BlockSpec((1, tile), lambda i: (i, 0)),    # indices (lane-dense row)
            pl.BlockSpec((1, 128), lambda i: (i, 0)),     # per-tile partial SSE
        ],
    )
    return pl.pallas_call(
        kernel,
        out_shape=(
            jax.ShapeDtypeStruct((n_rows_out, d), out_dtype),
            jax.ShapeDtypeStruct((n_tiles, tile), jnp.int32),
            jax.ShapeDtypeStruct((n_tiles, 128), jnp.float32),
        ),
        grid_spec=grid_spec,
        compiler_params=pltpu.CompilerParams(
            dimension_semantics=("parallel",),     # independent row tiles (v7x 2-TC sharding)
            vmem_limit_bytes=_vmem_limit_bytes()),
    )


def vector_quantizer_forward(x, embedding, commitment_cost=0.25, tile_n=1024):
    """Pallas VectorQuantizer forward. Returns (quantized, indices, loss)."""
    assert tile_n % 128 == 0, "tile_n must be a multiple of 128"
    orig_shape = x.shape
    k, d = embedding.shape
    assert orig_shape[-1] == d
    flat = x.reshape(-1, d)
    n = flat.shape[0]

    # Codebook: pad K to a multiple of 256 (full v6e/v7x MXU tiles; also a valid
    # 128-multiple on v5e).  Padded entries get +inf half-norm -> never argmin.
    k_pad = -(-k // 256) * 256
    e = embedding if k_pad == k else jnp.pad(embedding, ((0, k_pad - k), (0, 0)))
    e_f32 = e.astype(jnp.float32)
    e2_half = 0.5 * jnp.sum(e_f32 * e_f32, axis=1)[None, :]          # (1, K_pad) f32
    if k_pad != k:
        e2_half = jnp.where(jnp.arange(k_pad)[None, :] < k, e2_half, jnp.inf)

    # Row tiling.  Inputs larger than one tile are NOT padded: grid = cdiv(n, tile)
    # and the ragged tail is a partial block (garbage reads masked from the loss,
    # out-of-bounds stores discarded).  Sub-tile inputs get a single 128-aligned
    # tile with a cheap pad.
    n_tiles = -(-n // tile_n)
    if n_tiles == 1:
        tile = max(128, -(-n // 128) * 128)
        x_in = flat if tile == n else jnp.pad(flat, ((0, tile - n), (0, 0)))
        n_rows_out = tile
    else:
        tile = tile_n
        x_in = flat
        n_rows_out = n

    kernel = functools.partial(_vq_kernel, n_valid=n)
    try:
        q, idx, sse = _make_call(kernel, n_rows_out, n_tiles, tile, d, k_pad,
                                 x.dtype, True)(x_in, e, e2_half)
    except Exception:
        # Fallback in case this JAX build rejects pipeline_mode=pl.Buffered(1).
        q, idx, sse = _make_call(kernel, n_rows_out, n_tiles, tile, d, k_pad,
                                 x.dtype, False)(x_in, e, e2_half)

    loss = (1.0 + float(commitment_cost)) * jnp.sum(sse[:, 0]) / (n * d)
    if n_rows_out != n:
        q = q[:n]
    quantized = q.reshape(orig_shape)
    indices = idx.reshape(-1)[:n]
    return quantized, indices, loss


def _reference(x, embedding, commitment_cost):
    d = embedding.shape[1]
    flat = x.reshape(-1, d)
    dist = jnp.sqrt(jnp.sum((flat[:, None, :] - embedding[None, :, :]) ** 2, axis=-1))
    idx = jnp.argmin(dist, axis=1).astype(jnp.int32)
    q = embedding[idx].reshape(x.shape)
    mse = jnp.mean((q - x) ** 2)
    return q, idx, (1.0 + commitment_cost) * mse


if __name__ == "__main__":
    num_embeddings = 16
    embedding_dim = 32
    commitment_cost = 0.25

    key = jax.random.PRNGKey(0)
    ke, k1, k2, k3 = jax.random.split(key, 4)

    # deterministic parameter init, matching nn.Embedding.weight.uniform_(-1/K, 1/K)
    embedding = jax.random.uniform(
        ke, (num_embeddings, embedding_dim), dtype=jnp.float32,
        minval=-1.0 / num_embeddings, maxval=1.0 / num_embeddings)

    cases = [
        # 16 rows  -> single small padded tile
        jax.random.normal(k1, (2, 8, embedding_dim), jnp.float32) * 0.1,
        # 320 rows -> single 384-row tile (128-aligned, small pad)
        jax.random.normal(k2, (2, 160, embedding_dim), jnp.float32) * 0.1,
        # 1400 rows -> 2 tiles, unpadded ragged tail (partial-block path)
        jax.random.normal(k3, (2, 700, embedding_dim), jnp.float32) * 0.1,
    ]

    for xin in cases:
        quantized, indices, loss = vector_quantizer_forward(
            xin, embedding, commitment_cost=commitment_cost)
        jax.block_until_ready((quantized, indices, loss))

        q_ref, idx_ref, loss_ref = _reference(xin, embedding, commitment_cost)
        assert jnp.array_equal(indices, idx_ref), "indices mismatch"
        assert jnp.allclose(quantized, q_ref, atol=1e-5), "quantized mismatch"
        assert jnp.allclose(loss, loss_ref, atol=1e-5, rtol=1e-5), "loss mismatch"

    print("KERNEL_OK")
</pallas_src>

<mosaic_0001>
module attributes {stable_mosaic.version = 11 : i64} {
  func.func @_vq_kernel(%arg0: i32, %arg1: memref<128x32xf32, #tpu.memory_space<vmem>>, %arg2: memref<256x32xf32, #tpu.memory_space<vmem>>, %arg3: memref<1x256xf32, #tpu.memory_space<vmem>>, %arg4: memref<128x32xf32, #tpu.memory_space<vmem>>, %arg5: memref<1x128xi32, #tpu.memory_space<vmem>>, %arg6: memref<1x128xf32, #tpu.memory_space<vmem>>) attributes {dimension_semantics = [#tpu.dimension_semantics<parallel>], iteration_bounds = array<i64: 1>, scalar_prefetch = 0 : i64, scratch_operands = 0 : i64, tpu.core_type = #tpu.core_type<tc>, window_params = [{transform_indices = @transform_0, window_bounds = array<i64: 128, 32>}, {pipeline_mode = #tpu.pipeline_mode<synchronous>, transform_indices = @transform_1, window_bounds = array<i64: 256, 32>}, {pipeline_mode = #tpu.pipeline_mode<synchronous>, transform_indices = @transform_2, window_bounds = array<i64: 1, 256>}, {transform_indices = @transform_3, window_bounds = array<i64: 128, 32>}, {transform_indices = @transform_4, window_bounds = array<i64: 1, 128>}, {transform_indices = @transform_5, window_bounds = array<i64: 1, 128>}]} {
    %c0 = arith.constant 0 : index
    %c0_0 = arith.constant 0 : index
    %0 = vector.load %arg1[%c0, %c0_0] : memref<128x32xf32, #tpu.memory_space<vmem>>, vector<128x32xf32>
    %c0_1 = arith.constant 0 : index
    %c0_2 = arith.constant 0 : index
    %1 = vector.load %arg2[%c0_1, %c0_2] : memref<256x32xf32, #tpu.memory_space<vmem>>, vector<256x32xf32>
    %cst = arith.constant dense<0.000000e+00> : vector<128x256xf32>
    %2 = tpu.matmul %0, %1, %cst {dimension_numbers = #tpu.dot_dimension_numbers<[1], [1], [0], [0], [0, 0, 1, 0], [], []>} : vector<128x32xf32>, vector<256x32xf32>, vector<128x256xf32> -> vector<128x256xf32>
    %c0_3 = arith.constant 0 : index
    %c0_4 = arith.constant 0 : index
    %3 = vector.load %arg3[%c0_3, %c0_4] : memref<1x256xf32, #tpu.memory_space<vmem>>, vector<1x256xf32>
    %4 = vector.broadcast %3 : vector<1x256xf32> to vector<128x256xf32>
    %5 = arith.subf %4, %2 : vector<128x256xf32>
    %6 = tpu.iota {dimensions = array<i32: 1>} : vector<128x256xi32>
    %cst_5 = arith.constant dense<0x7F800000> : vector<128xf32>
    %7 = vector.multi_reduction <minimumf>, %5, %cst_5 [1] : vector<128x256xf32> to vector<128xf32>
    %8 = vector.shape_cast %7 : vector<128xf32> to vector<128x1xf32>
    %9 = vector.broadcast %8 : vector<128x1xf32> to vector<128x256xf32>
    %10 = arith.cmpf ole, %5, %9 : vector<128x256xf32>
    %c256_i32 = arith.constant 256 : i32
    %11 = vector.broadcast %c256_i32 : i32 to vector<128x256xi32>
    %12 = arith.select %10, %6, %11 : vector<128x256xi1>, vector<128x256xi32>
    %cst_6 = arith.constant dense<2147483647> : vector<128xi32>
    %13 = vector.multi_reduction <minsi>, %12, %cst_6 [1] : vector<128x256xi32> to vector<128xi32>
    %14 = vector.shape_cast %13 : vector<128xi32> to vector<1x128xi32>
    %c0_7 = arith.constant 0 : index
    %c0_8 = arith.constant 0 : index
    %15 = vector.load %arg5[%c0_7, %c0_8] : memref<1x128xi32, #tpu.memory_space<vmem>>, vector<1x128xi32>
    tpu.vector_store %arg5[%c0_7, %c0_8], %14 {strides = array<i32>} : memref<1x128xi32, #tpu.memory_space<vmem>>, vector<1x128xi32>,
    %16 = vector.shape_cast %13 : vector<128xi32> to vector<128x1xi32>
    %17 = vector.broadcast %16 : vector<128x1xi32> to vector<128x256xi32>
    %18 = arith.cmpi eq, %6, %17 : vector<128x256xi32>
    %19 = arith.extui %18 : vector<128x256xi1> to vector<128x256xi32>
    %20 = arith.sitofp %19 : vector<128x256xi32> to vector<128x256xf32>
    %cst_9 = arith.constant dense<0.000000e+00> : vector<128x32xf32>
    %21 = tpu.matmul %20, %1, %cst_9 {dimension_numbers = #tpu.dot_dimension_numbers<[1], [0], [0], [1], [0, 0, 1, 1], [], []>} : vector<128x256xf32>, vector<256x32xf32>, vector<128x32xf32> -> vector<128x32xf32>
    %c0_10 = arith.constant 0 : index
    %c0_11 = arith.constant 0 : index
    %22 = vector.load %arg4[%c0_10, %c0_11] : memref<128x32xf32, #tpu.memory_space<vmem>>, vector<128x32xf32>
    tpu.vector_store %arg4[%c0_10, %c0_11], %21 {strides = array<i32>} : memref<128x32xf32, #tpu.memory_space<vmem>>, vector<128x32xf32>,
    %c128_i32 = arith.constant 128 : i32
    %23 = arith.muli %arg0, %c128_i32 : i32
    %24 = tpu.iota {dimensions = array<i32: 0>} : vector<128x1xi32>
    %25 = vector.broadcast %23 : i32 to vector<128x1xi32>
    %26 = arith.addi %25, %24 : vector<128x1xi32>
    %c16_i32 = arith.constant 16 : i32
    %27 = vector.broadcast %c16_i32 : i32 to vector<128x1xi32>
    %28 = arith.cmpi slt, %26, %27 : vector<128x1xi32>
    %29 = arith.subf %21, %0 : vector<128x32xf32>
    %cst_12 = arith.constant 0.000000e+00 : f32
    %30 = vector.shape_cast %28 : vector<128x1xi1> to vector<128x1xi1>
    %31 = vector.broadcast %30 : vector<128x1xi1> to vector<128x32xi1>
    %32 = vector.broadcast %cst_12 : f32 to vector<128x32xf32>
    %33 = arith.select %31, %29, %32 : vector<128x32xi1>, vector<128x32xf32>
    %34 = arith.mulf %33, %33 : vector<128x32xf32>
    %35 = vector.shape_cast %34 : vector<128x32xf32> to vector<1x128x32xf32>
    %cst_13 = arith.constant dense<0.000000e+00> : vector<1xf32>
    %36 = vector.multi_reduction <add>, %35, %cst_13 [1, 2] : vector<1x128x32xf32> to vector<1xf32>
    %37 = vector.shape_cast %36 : vector<1xf32> to vector<1x1x1xf32>
    %38 = vector.extract %37[0, 0, 0] : f32 from vector<1x1x1xf32>
    %39 = vector.broadcast %38 : f32 to vector<1x128xf32>
    %c0_14 = arith.constant 0 : index
    %c0_15 = arith.constant 0 : index
    %40 = vector.load %arg6[%c0_14, %c0_15] : memref<1x128xf32, #tpu.memory_space<vmem>>, vector<1x128xf32>
    tpu.vector_store %arg6[%c0_14, %c0_15], %39 {strides = array<i32>} : memref<1x128xf32, #tpu.memory_space<vmem>>, vector<1x128xf32>,
    return
  }
  func.func @transform_0(%arg0: i32) -> (i32, i32) {
    %c0_i32 = arith.constant 0 : i32
    %c0_i32_0 = arith.constant 0 : i32
    return %arg0, %c0_i32 : i32, i32
  }
  func.func @transform_1(%arg0: i32) -> (i32, i32) {
    %c0_i32 = arith.constant 0 : i32
    %c0_i32_0 = arith.constant 0 : i32
    %c0_i32_1 = arith.constant 0 : i32
    return %c0_i32, %c0_i32_0 : i32, i32
  }
  func.func @transform_2(%arg0: i32) -> (i32, i32) {
    %c0_i32 = arith.constant 0 : i32
    %c0_i32_0 = arith.constant 0 : i32
    %c0_i32_1 = arith.constant 0 : i32
    return %c0_i32, %c0_i32_0 : i32, i32
  }
  func.func @transform_3(%arg0: i32) -> (i32, i32) {
    %c0_i32 = arith.constant 0 : i32
    %c0_i32_0 = arith.constant 0 : i32
    return %arg0, %c0_i32 : i32, i32
  }
  func.func @transform_4(%arg0: i32) -> (i32, i32) {
    %c0_i32 = arith.constant 0 : i32
    %c0_i32_0 = arith.constant 0 : i32
    return %arg0, %c0_i32 : i32, i32
  }
  func.func @transform_5(%arg0: i32) -> (i32, i32) {
    %c0_i32 = arith.constant 0 : i32
    %c0_i32_0 = arith.constant 0 : i32
    return %arg0, %c0_i32 : i32, i32
  }
}

module attributes {stable_mosaic.version = 11 : i64} {
  func.func @_vq_kernel(%arg0: i32, %arg1: memref<128x32xf32, #tpu.memory_space<vmem>>, %arg2: memref<256x32xf32, #tpu.memory_space<vmem>>, %arg3: memref<1x256xf32, #tpu.memory_space<vmem>>, %arg4: memref<128x32xf32, #tpu.memory_space<vmem>>, %arg5: memref<1x128xi32, #tpu.memory_space<vmem>>, %arg6: memref<1x128xf32, #tpu.memory_space<vmem>>) attributes {dimension_semantics = [#tpu.dimension_semantics<parallel>], iteration_bounds = array<i64: 1>, scalar_prefetch = 0 : i64, scratch_operands = 0 : i64, tpu.core_type = #tpu.core_type<tc>, window_params = [{transform_indices = @transform_0, window_bounds = array<i64: 128, 32>}, {pipeline_mode = #tpu.pipeline_mode<synchronous>, transform_indices = @transform_1, window_bounds = array<i64: 256, 32>}, {pipeline_mode = #tpu.pipeline_mode<synchronous>, transform_indices = @transform_2, window_bounds = array<i64: 1, 256>}, {transform_indices = @transform_3, window_bounds = array<i64: 128, 32>}, {transform_indices = @transform_4, window_bounds = array<i64: 1, 128>}, {transform_indices = @transform_5, window_bounds = array<i64: 1, 128>}]} {
    %c0 = arith.constant 0 : index
    %c0_0 = arith.constant 0 : index
    %0 = vector.load %arg1[%c0, %c0_0] : memref<128x32xf32, #tpu.memory_space<vmem>>, vector<128x32xf32>
    %c0_1 = arith.constant 0 : index
    %c0_2 = arith.constant 0 : index
    %1 = vector.load %arg2[%c0_1, %c0_2] : memref<256x32xf32, #tpu.memory_space<vmem>>, vector<256x32xf32>
    %cst = arith.constant dense<0.000000e+00> : vector<128x256xf32>
    %2 = tpu.matmul %0, %1, %cst {dimension_numbers = #tpu.dot_dimension_numbers<[1], [1], [0], [0], [0, 0, 1, 0], [], []>} : vector<128x32xf32>, vector<256x32xf32>, vector<128x256xf32> -> vector<128x256xf32>
    %c0_3 = arith.constant 0 : index
    %c0_4 = arith.constant 0 : index
    %3 = vector.load %arg3[%c0_3, %c0_4] : memref<1x256xf32, #tpu.memory_space<vmem>>, vector<1x256xf32>
    %4 = vector.broadcast %3 : vector<1x256xf32> to vector<128x256xf32>
    %5 = arith.subf %4, %2 : vector<128x256xf32>
    %6 = tpu.iota {dimensions = array<i32: 1>} : vector<128x256xi32>
    %cst_5 = arith.constant dense<0x7F800000> : vector<128xf32>
    %7 = vector.multi_reduction <minimumf>, %5, %cst_5 [1] : vector<128x256xf32> to vector<128xf32>
    %8 = vector.shape_cast %7 : vector<128xf32> to vector<128x1xf32>
    %9 = vector.broadcast %8 : vector<128x1xf32> to vector<128x256xf32>
    %10 = arith.cmpf ole, %5, %9 : vector<128x256xf32>
    %c256_i32 = arith.constant 256 : i32
    %11 = vector.broadcast %c256_i32 : i32 to vector<128x256xi32>
    %12 = arith.select %10, %6, %11 : vector<128x256xi1>, vector<128x256xi32>
    %cst_6 = arith.constant dense<2147483647> : vector<128xi32>
    %13 = vector.multi_reduction <minsi>, %12, %cst_6 [1] : vector<128x256xi32> to vector<128xi32>
    %14 = vector.shape_cast %13 : vector<128xi32> to vector<1x128xi32>
    %c0_7 = arith.constant 0 : index
    %c0_8 = arith.constant 0 : index
    %15 = vector.load %arg5[%c0_7, %c0_8] : memref<1x128xi32, #tpu.memory_space<vmem>>, vector<1x128xi32>
    tpu.vector_store %arg5[%c0_7, %c0_8], %14 {strides = array<i32>} : memref<1x128xi32, #tpu.memory_space<vmem>>, vector<1x128xi32>,
    %16 = vector.shape_cast %13 : vector<128xi32> to vector<128x1xi32>
    %17 = vector.broadcast %16 : vector<128x1xi32> to vector<128x256xi32>
    %18 = arith.cmpi eq, %6, %17 : vector<128x256xi32>
    %19 = arith.extui %18 : vector<128x256xi1> to vector<128x256xi32>
    %20 = arith.sitofp %19 : vector<128x256xi32> to vector<128x256xf32>
    %cst_9 = arith.constant dense<0.000000e+00> : vector<128x32xf32>
    %21 = tpu.matmul %20, %1, %cst_9 {dimension_numbers = #tpu.dot_dimension_numbers<[1], [0], [0], [1], [0, 0, 1, 1], [], []>} : vector<128x256xf32>, vector<256x32xf32>, vector<128x32xf32> -> vector<128x32xf32>
    %c0_10 = arith.constant 0 : index
    %c0_11 = arith.constant 0 : index
    %22 = vector.load %arg4[%c0_10, %c0_11] : memref<128x32xf32, #tpu.memory_space<vmem>>, vector<128x32xf32>
    tpu.vector_store %arg4[%c0_10, %c0_11], %21 {strides = array<i32>} : memref<128x32xf32, #tpu.memory_space<vmem>>, vector<128x32xf32>,
    %c128_i32 = arith.constant 128 : i32
    %23 = arith.muli %arg0, %c128_i32 : i32
    %24 = tpu.iota {dimensions = array<i32: 0>} : vector<128x1xi32>
    %25 = vector.broadcast %23 : i32 to vector<128x1xi32>
    %26 = arith.addi %25, %24 : vector<128x1xi32>
    %c16_i32 = arith.constant 16 : i32
    %27 = vector.broadcast %c16_i32 : i32 to vector<128x1xi32>
    %28 = arith.cmpi slt, %26, %27 : vector<128x1xi32>
    %29 = arith.subf %21, %0 : vector<128x32xf32>
    %cst_12 = arith.constant 0.000000e+00 : f32
    %30 = vector.shape_cast %28 : vector<128x1xi1> to vector<128x1xi1>
    %31 = vector.broadcast %30 : vector<128x1xi1> to vector<128x32xi1>
    %32 = vector.broadcast %cst_12 : f32 to vector<128x32xf32>
    %33 = arith.select %31, %29, %32 : vector<128x32xi1>, vector<128x32xf32>
    %34 = arith.mulf %33, %33 : vector<128x32xf32>
    %35 = vector.shape_cast %34 : vector<128x32xf32> to vector<1x128x32xf32>
    %cst_13 = arith.constant dense<0.000000e+00> : vector<1xf32>
    %36 = vector.multi_reduction <add>, %35, %cst_13 [1, 2] : vector<1x128x32xf32> to vector<1xf32>
    %37 = vector.shape_cast %36 : vector<1xf32> to vector<1x1x1xf32>
    %38 = vector.extract %37[0, 0, 0] : f32 from vector<1x1x1xf32>
    %39 = vector.broadcast %38 : f32 to vector<1x128xf32>
    %c0_14 = arith.constant 0 : index
    %c0_15 = arith.constant 0 : index
    %40 = vector.load %arg6[%c0_14, %c0_15] : memref<1x128xf32, #tpu.memory_space<vmem>>, vector<1x128xf32>
    tpu.vector_store %arg6[%c0_14, %c0_15], %39 {strides = array<i32>} : memref<1x128xf32, #tpu.memory_space<vmem>>, vector<1x128xf32>,
    return
  }
  func.func @transform_0(%arg0: i32) -> (i32, i32) {
    %c0_i32 = arith.constant 0 : i32
    %c0_i32_0 = arith.constant 0 : i32
    return %arg0, %c0_i32 : i32, i32
  }
  func.func @transform_1(%arg0: i32) -> (i32, i32) {
    %c0_i32 = arith.constant 0 : i32
    %c0_i32_0 = arith.constant 0 : i32
    %c0_i32_1 = arith.constant 0 : i32
    return %c0_i32, %c0_i32_0 : i32, i32
  }
  func.func @transform_2(%arg0: i32) -> (i32, i32) {
    %c0_i32 = arith.constant 0 : i32
    %c0_i32_0 = arith.constant 0 : i32
    %c0_i32_1 = arith.constant 0 : i32
    return %c0_i32, %c0_i32_0 : i32, i32
  }
  func.func @transform_3(%arg0: i32) -> (i32, i32) {
    %c0_i32 = arith.constant 0 : i32
    %c0_i32_0 = arith.constant 0 : i32
    return %arg0, %c0_i32 : i32, i32
  }
  func.func @transform_4(%arg0: i32) -> (i32, i32) {
    %c0_i32 = arith.constant 0 : i32
    %c0_i32_0 = arith.constant 0 : i32
    return %arg0, %c0_i32 : i32, i32
  }
  func.func @transform_5(%arg0: i32) -> (i32, i32) {
    %c0_i32 = arith.constant 0 : i32
    %c0_i32_0 = arith.constant 0 : i32
    return %arg0, %c0_i32 : i32, i32
  }
}

</mosaic_0001>

<bundles_post_ra>
// kernel: tpu_custom_call.1
= control target key start
LH: loop header
LB: loop body
LE: loop exit
PB: predicated region body
PF: predicated region fallthrough
CT: control target
= control target key end

     0   :  { %11 = vsyncpa [#allocation3], 0  ;;  %vm67_vm0 = vcmask 261120   ;;  %s2246_s0 = inlined_call_operand.vmem [shape: f32[128,32], index: 0, kind: input, shape index: {}]   ;;  %s2247_s1 = inlined_call_operand.vmem [shape: f32[256,32], index: 1, kind: input, shape index: {}]   ;;  %s2248_s2 = inlined_call_operand.vmem [shape: f32[1,256], index: 2, kind: input, shape index: {}]   ;;  %s2249_s3 = inlined_call_operand.vmem [shape: f32[128,32], index: 3, kind: output, shape index: {0}]   ;;  %s2250_s4 = inlined_call_operand.hbm [shape: s32[1,128], index: 4, kind: output, shape index: {1}]   ;;  %s2251_s5 = inlined_call_operand.hbm [shape: f32[1,128], index: 5, kind: output, shape index: {2}]  }
   0x1   :  { %v50_v0 = vld [vmem:[%s2247_s1 + $0x78] sm:$0xff]  ;;  %v49_v2 = vld [vmem:[%s2247_s1 + $0x70] sm:$0xff]  ;;  %v48_v4 = vld [vmem:[%s2247_s1 + $0x68] sm:$0xff] }
   0x2   :  { %v66_v1 = vld [vmem:[%s2247_s1 + $0xf8] sm:$0xff]  ;;  %1264 = vmatpush.xpose.msk.msra.mxu0 %vm67_vm0, %v50_v0  ;;  %v65_v3 = vld [vmem:[%s2247_s1 + $0xf0] sm:$0xff]  ;;  %909 = vmatpush.msra.mxu2 %v50_v0  ;;  %v64_v5 = vld [vmem:[%s2247_s1 + $0xe8] sm:$0xff] }
   0x3   :  { %1296 = vmatpush.xpose.msk.msra.mxu1 %vm67_vm0, %v66_v1  ;;  %974 = vmatpush.msra.mxu3 %v66_v1  ;;  %v47_v6 = vld [vmem:[%s2247_s1 + $0x60] sm:$0xff] }
   0x4   :  { %910 = vmatpush.msra.mxu2 %v49_v2  ;;  %v63_v7 = vld [vmem:[%s2247_s1 + $0xe0] sm:$0xff] }
   0x5   :  { %975 = vmatpush.msra.mxu3 %v65_v3 }
   0x6   :  { %1265 = vmatpush.xpose.msk.msra.mxu0 %vm67_vm0, %v49_v2  ;;  %911 = vmatpush.msra.mxu2 %v48_v4 }
   0x7   :  { %1297 = vmatpush.xpose.msk.msra.mxu1 %vm67_vm0, %v65_v3  ;;  %976 = vmatpush.msra.mxu3 %v64_v5 }
   0x8   :  { %12 = vsyncpa [#allocation5], 0  ;;  %912 = vmatpush.msra.mxu2 %v47_v6  ;;  %v46_v8 = vld [vmem:[%s2247_s1 + $0x58] sm:$0xff]  ;;  %v45_v10 = vld [vmem:[%s2247_s1 + $0x50] sm:$0xff]  ;;  %s1237_s9 = sshll.u32 %s2250_s4, 4  ;;  %s1453_s22 = smov [#allocation4]   ;;  %s1238_s9 = int_to_ptr.hbm [resolvable:$true] %s1237_s9 }
   0x9   :  { %977 = vmatpush.msra.mxu3 %v63_v7  ;;  %v62_v9 = vld [vmem:[%s2247_s1 + $0xd8] sm:$0xff]  ;;  %v61_v11 = vld [vmem:[%s2247_s1 + $0xd0] sm:$0xff]  ;;  %v44_v12 = vld [vmem:[%s2247_s1 + $0x48] sm:$0xff]  ;;  %s1246_s23 = sshll.u32 %s1453_s22, 4  ;;  %s1248_s26 = sshll.u32 %s2251_s5, 4  ;;  %s1247_s23 = int_to_ptr.vmem [resolvable:$true] %s1246_s23  ;;  %s1249_s26 = int_to_ptr.hbm [resolvable:$true] %s1248_s26 }
   0xa   :  { %1266 = vmatpush.xpose.msk.msra.mxu0 %vm67_vm0, %v48_v4  ;;  %913 = vmatpush.msra.mxu2 %v46_v8  ;;  %v60_v13 = vld [vmem:[%s2247_s1 + $0xc8] sm:$0xff]  ;;  %v43_v14 = vld [vmem:[%s2247_s1 + $0x40] sm:$0xff]  ;;  %v42_v16 = vld [vmem:[%s2247_s1 + $0x38] sm:$0xff] }
   0xb   :  { %1298 = vmatpush.xpose.msk.msra.mxu1 %vm67_vm0, %v64_v5  ;;  %978 = vmatpush.msra.mxu3 %v62_v9  ;;  %v59_v15 = vld [vmem:[%s2247_s1 + $0xc0] sm:$0xff]  ;;  %v58_v17 = vld [vmem:[%s2247_s1 + $0xb8] sm:$0xff]  ;;  %v41_v18 = vld [vmem:[%s2247_s1 + $0x30] sm:$0xff] }
   0xc   :  { %914 = vmatpush.msra.mxu2 %v45_v10  ;;  %v57_v19 = vld [vmem:[%s2247_s1 + $0xb0] sm:$0xff]  ;;  %v40_v20 = vld [vmem:[%s2247_s1 + $0x28] sm:$0xff]  ;;  %v39_v22 = vld [vmem:[%s2247_s1 + $0x20] sm:$0xff] }
   0xd   :  { %979 = vmatpush.msra.mxu3 %v61_v11  ;;  %v56_v21 = vld [vmem:[%s2247_s1 + $0xa8] sm:$0xff]  ;;  %v55_v23 = vld [vmem:[%s2247_s1 + $0xa0] sm:$0xff]  ;;  %v38_v24 = vld [vmem:[%s2247_s1 + $0x18] sm:$0xff] }
   0xe   :  { %1267 = vmatpush.xpose.msk.msra.mxu0 %vm67_vm0, %v47_v6  ;;  %915 = vmatpush.msra.mxu2 %v44_v12  ;;  %v54_v25 = vld [vmem:[%s2247_s1 + $0x98] sm:$0xff]  ;;  %v37_v26 = vld [vmem:[%s2247_s1 + $0x10] sm:$0xff]  ;;  %v36_v28 = vld [vmem:[%s2247_s1 + $0x8] sm:$0xff] }
   0xf   :  { %1299 = vmatpush.xpose.msk.msra.mxu1 %vm67_vm0, %v63_v7  ;;  %980 = vmatpush.msra.mxu3 %v60_v13  ;;  %v53_v27 = vld [vmem:[%s2247_s1 + $0x90] sm:$0xff]  ;;  %v52_v29 = vld [vmem:[%s2247_s1 + $0x88] sm:$0xff]  ;;  %v35_v30 = vld [vmem:[%s2247_s1] sm:$0xff] }
  0x10   :  { %916 = vmatpush.msra.mxu2 %v43_v14  ;;  %v51_v31 = vld [vmem:[%s2247_s1 + $0x80] sm:$0xff]  ;;  %v20_v33 = vld [vmem:[%s2246_s0 + $0x8] sm:$0xff]  ;;  %v21_v34 = vld [vmem:[%s2246_s0 + $0x10] sm:$0xff] }
  0x11   :  { %981 = vmatpush.msra.mxu3 %v59_v15  ;;  %v19_v32 = vld [vmem:[%s2246_s0] sm:$0xff]  ;;  %v22_v35 = vld [vmem:[%s2246_s0 + $0x18] sm:$0xff]  ;;  %v24_v37 = vld [vmem:[%s2246_s0 + $0x28] sm:$0xff] }
  0x12   :  { %1268 = vmatpush.xpose.msk.msra.mxu0 %vm67_vm0, %v46_v8  ;;  %917 = vmatpush.msra.mxu2 %v42_v16  ;;  %v23_v36 = vld [vmem:[%s2246_s0 + $0x20] sm:$0xff]  ;;  %v25_v38 = vld [vmem:[%s2246_s0 + $0x30] sm:$0xff]  ;;  %v26_v39 = vld [vmem:[%s2246_s0 + $0x38] sm:$0xff] }
  0x13   :  { %1300 = vmatpush.xpose.msk.msra.mxu1 %vm67_vm0, %v62_v9  ;;  %982 = vmatpush.msra.mxu3 %v58_v17  ;;  %v27_v40 = vld [vmem:[%s2246_s0 + $0x40] sm:$0xff]  ;;  %v28_v41 = vld [vmem:[%s2246_s0 + $0x48] sm:$0xff]  ;;  %v29_v42 = vld [vmem:[%s2246_s0 + $0x50] sm:$0xff] }
  0x14   :  { %918 = vmatpush.msra.mxu2 %v41_v18  ;;  %v342_v43 = vld [vmem:[%s2248_s2] sm:$0x3]  ;;  %v30_v46 = vld [vmem:[%s2246_s0 + $0x58] sm:$0xff]  ;;  %v32_v58 = vld [vmem:[%s2246_s0 + $0x68] sm:$0xff]  ;;  %s1452_s2 = smov [#allocation2]  }
  0x15   :  { %983 = vmatpush.msra.mxu3 %v57_v19  ;;  %v1670_v44 = vperm.slane %v342_v43, 0  ;;  %v1672_v45 = vperm.slane %v342_v43, 1  ;;  %v31_v52 = vld [vmem:[%s2246_s0 + $0x60] sm:$0xff]  ;;  %v33_v0 = vld [vmem:[%s2246_s0 + $0x70] sm:$0xff]  ;;  %v34_v6 = vld [vmem:[%s2246_s0 + $0x78] sm:$0xff]  ;;  %s1235_s1 = sshll.u32 %s1452_s2, 4  ;;  %s1236_s1 = int_to_ptr.vmem [resolvable:$true] %s1235_s1 }
  0x16   :  { %1269 = vmatpush.xpose.msk.msra.mxu0 %vm67_vm0, %v45_v10  ;;  %919 = vmatpush.msra.mxu2 %v40_v20 }
  0x17   :  { %1301 = vmatpush.xpose.msk.msra.mxu1 %vm67_vm0, %v61_v11  ;;  %984 = vmatpush.msra.mxu3 %v56_v21 }
  0x18   :  { %920 = vmatpush.msra.mxu2 %v39_v22 }
  0x19   :  { %985 = vmatpush.msra.mxu3 %v55_v23 }
  0x1a   :  { %1270 = vmatpush.xpose.msk.msra.mxu0 %vm67_vm0, %v44_v12  ;;  %921 = vmatpush.msra.mxu2 %v38_v24 }
  0x1b   :  { %1302 = vmatpush.xpose.msk.msra.mxu1 %vm67_vm0, %v60_v13  ;;  %986 = vmatpush.msra.mxu3 %v54_v25 }
  0x1c   :  { %922 = vmatpush.msra.mxu2 %v37_v26 }
  0x1d   :  { %987 = vmatpush.msra.mxu3 %v53_v27 }
  0x1e   :  { %1271 = vmatpush.xpose.msk.msra.mxu0 %vm67_vm0, %v43_v14  ;;  %923 = vmatpush.msra.mxu2 %v36_v28 }
  0x1f   :  { %1303 = vmatpush.xpose.msk.msra.mxu1 %vm67_vm0, %v59_v15  ;;  %988 = vmatpush.msra.mxu3 %v52_v29 }
  0x20   :  { %924 = vmatpush.msra.mxu2 %v35_v30 }
  0x21   :  { %989 = vmatpush.msra.mxu3 %v51_v31 }
  0x22   :  { %1272 = vmatpush.xpose.msk.msra.mxu0 %vm67_vm0, %v42_v16 }
  0x23   :  { %1304 = vmatpush.xpose.msk.msra.mxu1 %vm67_vm0, %v58_v17 }
  0x26   :  { %1273 = vmatpush.xpose.msk.msra.mxu0 %vm67_vm0, %v41_v18 }
  0x27   :  { %1305 = vmatpush.xpose.msk.msra.mxu1 %vm67_vm0, %v57_v19 }
  0x2a   :  { %1274 = vmatpush.xpose.msk.msra.mxu0 %vm67_vm0, %v40_v20 }
  0x2b   :  { %1306 = vmatpush.xpose.msk.msra.mxu1 %vm67_vm0, %v56_v21 }
  0x2e   :  { %1275 = vmatpush.xpose.msk.msra.mxu0 %vm67_vm0, %v39_v22 }
  0x2f   :  { %1307 = vmatpush.xpose.msk.msra.mxu1 %vm67_vm0, %v55_v23 }
  0x32   :  { %1276 = vmatpush.xpose.msk.msra.mxu0 %vm67_vm0, %v38_v24 }
  0x33   :  { %1308 = vmatpush.xpose.msk.msra.mxu1 %vm67_vm0, %v54_v25 }
  0x36   :  { %1277 = vmatpush.xpose.msk.msra.mxu0 %vm67_vm0, %v37_v26 }
  0x37   :  { %1309 = vmatpush.xpose.msk.msra.mxu1 %vm67_vm0, %v53_v27  ;;  %v380_v27 = vlaneseq }
  0x3a   :  { %1278 = vmatpush.xpose.msk.msra.mxu0 %vm67_vm0, %v36_v28 }
  0x3b   :  { %1310 = vmatpush.xpose.msk.msra.mxu1 %vm67_vm0, %v52_v29 }
  0x3e   :  { %1279 = vmatpush.xpose.msk.msra.mxu0 %vm67_vm0, %v35_v30  ;;  %v1763_v30 = vand.u32 127, %v380_v27 }
  0x3f   :  { %1311 = vmatpush.xpose.msk.msra.mxu1 %vm67_vm0, %v51_v31 }
  0x40   :  { %v1766_v31 = vadd.s32 128, %v1763_v30 }
  0x41   :  { %1280 = vmatmul.msk.f32.vlgmr.msra.gmra.mxu0 %vm67_vm0, %v19_v32 }
  0x42   :  { %1312 = vmatmul.msk.f32.vlgmr.msra.gmra.mxu1 %vm67_vm0, %v19_v32 }
  0x49   :  { %1281 = vmatmul.msk.f32.gmra.mxu0 %vm67_vm0, %v20_v33 }
  0x4a   :  { %1313 = vmatmul.msk.f32.gmra.mxu1 %vm67_vm0, %v20_v33 }
  0x51   :  { %1282 = vmatmul.msk.f32.gmra.mxu0 %vm67_vm0, %v21_v34 }
  0x52   :  { %1314 = vmatmul.msk.f32.gmra.mxu1 %vm67_vm0, %v21_v34 }
  0x59   :  { %1283 = vmatmul.msk.f32.gmra.mxu0 %vm67_vm0, %v22_v35 }
  0x5a   :  { %1315 = vmatmul.msk.f32.gmra.mxu1 %vm67_vm0, %v22_v35 }
  0x61   :  { %1284 = vmatmul.msk.f32.gmra.mxu0 %vm67_vm0, %v23_v36 }
  0x62   :  { %1316 = vmatmul.msk.f32.gmra.mxu1 %vm67_vm0, %v23_v36 }
  0x69   :  { %1285 = vmatmul.msk.f32.gmra.mxu0 %vm67_vm0, %v24_v37 }
  0x6a   :  { %1317 = vmatmul.msk.f32.gmra.mxu1 %vm67_vm0, %v24_v37 }
  0x71   :  { %1286 = vmatmul.msk.f32.gmra.mxu0 %vm67_vm0, %v25_v38 }
  0x72   :  { %1318 = vmatmul.msk.f32.gmra.mxu1 %vm67_vm0, %v25_v38 }
  0x79   :  { %1287 = vmatmul.msk.f32.gmra.mxu0 %vm67_vm0, %v26_v39 }
  0x7a   :  { %1319 = vmatmul.msk.f32.gmra.mxu1 %vm67_vm0, %v26_v39 }
  0x81   :  { %1288 = vmatmul.msk.f32.gmra.mxu0 %vm67_vm0, %v27_v40 }
  0x82   :  { %1320 = vmatmul.msk.f32.gmra.mxu1 %vm67_vm0, %v27_v40 }
  0x89   :  { %1289 = vmatmul.msk.f32.gmra.mxu0 %vm67_vm0, %v28_v41 }
  0x8a   :  { %1321 = vmatmul.msk.f32.gmra.mxu1 %vm67_vm0, %v28_v41 }
  0x91   :  { %1290 = vmatmul.msk.f32.gmra.mxu0 %vm67_vm0, %v29_v42 }
  0x92   :  { %1322 = vmatmul.msk.f32.gmra.mxu1 %vm67_vm0, %v29_v42 }
  0x99   :  { %1291 = vmatmul.msk.f32.gmra.mxu0 %vm67_vm0, %v30_v46 }
  0x9a   :  { %1323 = vmatmul.msk.f32.gmra.mxu1 %vm67_vm0, %v30_v46 }
  0xa1   :  { %1292 = vmatmul.msk.f32.gmra.mxu0 %vm67_vm0, %v31_v52 }
  0xa2   :  { %1324 = vmatmul.msk.f32.gmra.mxu1 %vm67_vm0, %v31_v52 }
  0xa9   :  { %1293 = vmatmul.msk.f32.gmra.mxu0 %vm67_vm0, %v32_v58 }
  0xaa   :  { %1325 = vmatmul.msk.f32.gmra.mxu1 %vm67_vm0, %v32_v58 }
  0xb1   :  { %1294 = vmatmul.msk.f32.gmra.mxu0 %vm67_vm0, %v33_v0 }
  0xb2   :  { %1326 = vmatmul.msk.f32.gmra.mxu1 %vm67_vm0, %v33_v0 }
  0xb9   :  { %1295 = vmatmul.msk.f32.gmra.mxu0 %vm67_vm0, %v34_v6 }
  0xba   :  { %1327 = vmatmul.msk.f32.gmra.mxu1 %vm67_vm0, %v34_v6 }
  0xbe   :  { %v229_v47 = vpop.f32.mrf.mxu0 }
  0xbf   :  { %v294_v48 = vpop.f32.mrf.mxu1  ;;  %v1680_v49 = vsub.f32 %v1670_v44, %v229_v47 }
  0xc0   :  { %v1683_v50 = vsub.f32 %v1672_v45, %v294_v48 }
  0xc2   :  { %v383_v51 = vmin.f32 %v1680_v49, %v1683_v50 }
  0xc4   :  { %384 = vmin.xlane.f32.xlu0 %v383_v51 }
  0xc6   :  { %v232_v53 = vpop.f32.mrf.mxu0 }
  0xc7   :  { %v297_v54 = vpop.f32.mrf.mxu1  ;;  %v1693_v55 = vsub.f32 %v1670_v44, %v232_v53 }
  0xc8   :  { %v1696_v56 = vsub.f32 %v1672_v45, %v297_v54 }
  0xca   :  { %v386_v57 = vmin.f32 %v1693_v55, %v1696_v56 }
  0xcc   :  { %387 = vmin.xlane.f32.xlu0 %v386_v57 }
  0xce   :  { %v235_v59 = vpop.f32.mrf.mxu0 }
  0xcf   :  { %v300_v60 = vpop.f32.mrf.mxu1  ;;  %v1706_v61 = vsub.f32 %v1670_v44, %v235_v59 }
  0xd0   :  { %v1709_v62 = vsub.f32 %v1672_v45, %v300_v60 }
  0xd2   :  { %v389_v63 = vmin.f32 %v1706_v61, %v1709_v62 }
  0xd4   :  { %390 = vmin.xlane.f32.xlu1 %v389_v63 }
  0xd6   :  { %v238_v1 = vpop.f32.mrf.mxu0 }
  0xd7   :  { %v303_v2 = vpop.f32.mrf.mxu1  ;;  %v1719_v3 = vsub.f32 %v1670_v44, %v238_v1 }
  0xd8   :  { %v1722_v4 = vsub.f32 %v1672_v45, %v303_v2 }
  0xda   :  { %v392_v5 = vmin.f32 %v1719_v3, %v1722_v4 }
  0xdc   :  { %393 = vmin.xlane.f32.xlu1 %v392_v5 }
  0xde   :  { %v241_v7 = vpop.f32.mrf.mxu0 }
  0xdf   :  { %v306_v8 = vpop.f32.mrf.mxu1  ;;  %v1732_v9 = vsub.f32 %v1670_v44, %v241_v7 }
  0xe0   :  { %v1735_v10 = vsub.f32 %v1672_v45, %v306_v8 }
  0xe2   :  { %v395_v11 = vmin.f32 %v1732_v9, %v1735_v10 }
  0xe4   :  { %396 = vmin.xlane.f32.xlu2 %v395_v11 }
  0xe6   :  { %v244_v12 = vpop.f32.mrf.mxu0 }
  0xe7   :  { %v309_v13 = vpop.f32.mrf.mxu1  ;;  %v1740_v14 = vsub.f32 %v1670_v44, %v244_v12 }
  0xe8   :  { %v1743_v15 = vsub.f32 %v1672_v45, %v309_v13 }
  0xea   :  { %v398_v16 = vmin.f32 %v1740_v14, %v1743_v15 }
  0xec   :  { %399 = vmin.xlane.f32.xlu2 %v398_v16 }
  0xee   :  { %v247_v17 = vpop.f32.mrf.mxu0 }
  0xef   :  { %v312_v18 = vpop.f32.mrf.mxu1  ;;  %v1748_v19 = vsub.f32 %v1670_v44, %v247_v17 }
  0xf0   :  { %v1751_v20 = vsub.f32 %v1672_v45, %v312_v18 }
  0xf2   :  { %v401_v21 = vmin.f32 %v1748_v19, %v1751_v20 }
  0xf4   :  { %402 = vmin.xlane.f32.xlu0 %v401_v21 }
  0xf6   :  { %v250_v22 = vpop.f32.mrf.mxu0 }
  0xf7   :  { %v315_v23 = vpop.f32.mrf.mxu1  ;;  %v1756_v24 = vsub.f32 %v1670_v44, %v250_v22 }
  0xf8   :  { %v1759_v25 = vsub.f32 %v1672_v45, %v315_v23 }
  0xfa   :  { %v404_v26 = vmin.f32 %v1756_v24, %v1759_v25 }
  0xfc   :  { %405 = vmin.xlane.f32.xlu2 %v404_v26 }
  0xfe   :  { %v253_v28 = vpop.f32.mrf.mxu0 }
  0xff   :  { %v318_v29 = vpop.f32.mrf.mxu1  ;;  %v1781_v41 = vsub.f32 %v1670_v44, %v253_v28 }
 0x100   :  { %v1784_v42 = vsub.f32 %v1672_v45, %v318_v29 }
 0x102   :  { %v407_v51 = vmin.f32 %v1781_v41, %v1784_v42 }
 0x106   :  { %v256_v33 = vpop.f32.mrf.mxu0 }
 0x107   :  { %v321_v36 = vpop.f32.mrf.mxu1  ;;  %v1796_v54 = vsub.f32 %v1670_v44, %v256_v33 }
 0x10e   :  { %v259_v47 = vpop.f32.mrf.mxu0 }
 0x10f   :  { %v1814_v1 = vsub.f32 %v1670_v44, %v259_v47 }
 0x137   :  { %v385_v32 = vpop.xlane.xlu0 %384 }
 0x138   :  { %vm431_vm1 = vcmp.le.f32.partialorder %v1680_v49, %v385_v32  ;;  %vm432_vm2 = vcmp.le.f32.partialorder %v1683_v50, %v385_v32  ;;  %v324_v49 = vpop.f32.mrf.mxu1 }
 0x139   :  { %v463_v34 = vsel %vm431_vm1, %v1763_v30, 256  ;;  %v464_v35 = vsel %vm432_vm2, %v1766_v31, 256  ;;  %v1820_v2 = vsub.f32 %v1672_v45, %v324_v49 }
 0x13a   :  { %vm495_vm3 = vcmp.lt.s32.totalorder %v463_v34, %v464_v35 }
 0x13b   :  { %v1772_v37 = vsel %vm495_vm3, %v463_v34, %v464_v35 }
 0x13c   :  { %v498_v38 = vshra.s32 %v1772_v37, 16 }
 0x13e   :  { %v1775_v39 = vcvt.s32.f32 %v498_v38 }
 0x13f   :  { %v388_v40 = vpop.xlane.xlu0 %387 }
 0x140   :  { %vm433_vm4 = vcmp.le.f32.partialorder %v1693_v55, %v388_v40  ;;  %vm434_vm5 = vcmp.le.f32.partialorder %v1696_v56, %v388_v40  ;;  %501 = vmin.xlane.f32.xlu1 %v1775_v39  ;;  %v1802_v55 = vsub.f32 %v1672_v45, %v321_v36 }
 0x141   :  { %v465_v43 = vsel %vm433_vm4, %v1763_v30, 256  ;;  %v466_v46 = vsel %vm434_vm5, %v1766_v31, 256 }
 0x142   :  { %vm511_vm6 = vcmp.lt.s32.totalorder %v465_v43, %v466_v46  ;;  %v410_v60 = vmin.f32 %v1796_v54, %v1802_v55 }
 0x143   :  { %v1788_v48 = vsel %vm511_vm6, %v465_v43, %v466_v46 }
 0x144   :  { %v514_v50 = vshra.s32 %v1788_v48, 16 }
 0x146   :  { %v1793_v52 = vcvt.s32.f32 %v514_v50 }
 0x147   :  { %v391_v53 = vpop.xlane.xlu1 %390 }
 0x148   :  { %vm435_vm7 = vcmp.le.f32.partialorder %v1706_v61, %v391_v53  ;;  %vm436_vm8 = vcmp.le.f32.partialorder %v1709_v62, %v391_v53  ;;  %517 = vmin.xlane.f32.xlu0 %v1793_v52  ;;  %408 = vmin.xlane.f32.xlu1 %v407_v51  ;;  %v262_v61 = vpop.f32.mrf.mxu0  ;;  %v327_v62 = vpop.f32.mrf.mxu1 }
 0x149   :  { %v467_v56 = vsel %vm435_vm7, %v1763_v30, 256  ;;  %v468_v57 = vsel %vm436_vm8, %v1766_v31, 256  ;;  %v1832_v13 = vsub.f32 %v1670_v44, %v262_v61  ;;  %v1838_v17 = vsub.f32 %v1672_v45, %v327_v62 }
 0x14a   :  { %vm527_vm9 = vcmp.lt.s32.totalorder %v467_v56, %v468_v57 }
 0x14b   :  { %v1806_v58 = vsel %vm527_vm9, %v467_v56, %v468_v57 }
 0x14c   :  { %v530_v59 = vshra.s32 %v1806_v58, 16 }
 0x14e   :  { %v1811_v63 = vcvt.s32.f32 %v530_v59 }
 0x14f   :  { %v394_v0 = vpop.xlane.xlu1 %393 }
 0x150   :  { %vm437_vm10 = vcmp.le.f32.partialorder %v1719_v3, %v394_v0  ;;  %vm438_vm11 = vcmp.le.f32.partialorder %v1722_v4, %v394_v0  ;;  %533 = vmin.xlane.f32.xlu2 %v1811_v63  ;;  %411 = vmin.xlane.f32.xlu0 %v410_v60  ;;  %v413_v3 = vmin.f32 %v1814_v1, %v1820_v2  ;;  %v265_v4 = vpop.f32.mrf.mxu0  ;;  %v330_v16 = vpop.f32.mrf.mxu1 }
 0x151   :  { %v469_v5 = vsel %vm437_vm10, %v1763_v30, 256  ;;  %v470_v6 = vsel %vm438_vm11, %v1766_v31, 256  ;;  %v1850_v27 = vsub.f32 %v1670_v44, %v265_v4  ;;  %v1856_v28 = vsub.f32 %v1672_v45, %v330_v16 }
 0x152   :  { %vm543_vm12 = vcmp.lt.s32.totalorder %v469_v5, %v470_v6 }
 0x153   :  { %v1824_v7 = vsel %vm543_vm12, %v469_v5, %v470_v6 }
 0x154   :  { %v546_v8 = vshra.s32 %v1824_v7, 16 }
 0x156   :  { %v1829_v11 = vcvt.s32.f32 %v546_v8 }
 0x157   :  { %v397_v12 = vpop.xlane.xlu2 %396 }
 0x158   :  { %vm439_vm13 = vcmp.le.f32.partialorder %v1732_v9, %v397_v12  ;;  %vm440_vm14 = vcmp.le.f32.partialorder %v1735_v10, %v397_v12  ;;  %549 = vmin.xlane.f32.xlu1 %v1829_v11  ;;  %414 = vmin.xlane.f32.xlu2 %v413_v3  ;;  %v416_v9 = vmin.f32 %v1832_v13, %v1838_v17  ;;  %v268_v33 = vpop.f32.mrf.mxu0  ;;  %v333_v34 = vpop.f32.mrf.mxu1  ;;  %v497_v12 = vand.u32 65535, %v1772_v37 }
 0x159   :  { %v471_v18 = vsel %vm439_vm13, %v1763_v30, 256  ;;  %v472_v21 = vsel %vm440_vm14, %v1766_v31, 256  ;;  %v1868_v40 = vsub.f32 %v1670_v44, %v268_v33  ;;  %v1874_v43 = vsub.f32 %v1672_v45, %v333_v34 }
 0x15a   :  { %vm559_vm15 = vcmp.lt.s32.totalorder %v471_v18, %v472_v21 }
 0x15b   :  { %v1842_v22 = vsel %vm559_vm15, %v471_v18, %v472_v21  ;;  %v499_v18 = vcvt.s32.f32 %v497_v12 }
 0x15c   :  { %v562_v23 = vshra.s32 %v1842_v22, 16 }
 0x15e   :  { %v1847_v26 = vcvt.s32.f32 %v562_v23 }
 0x15f   :  { %v400_v10 = vpop.xlane.xlu2 %399 }
 0x160   :  { %vm441_vm1 = vcmp.le.f32.partialorder %v1740_v14, %v400_v10  ;;  %vm442_vm2 = vcmp.le.f32.partialorder %v1743_v15, %v400_v10  ;;  %565 = vmin.xlane.f32.xlu0 %v1847_v26  ;;  %417 = vmin.xlane.f32.xlu1 %v416_v9  ;;  %v419_v14 = vmin.f32 %v1850_v27, %v1856_v28  ;;  %v271_v50 = vpop.f32.mrf.mxu0  ;;  %v336_v51 = vpop.f32.mrf.mxu1 }
 0x161   :  { %v473_v29 = vsel %vm441_vm1, %v1763_v30, 256  ;;  %v474_v32 = vsel %vm442_vm2, %v1766_v31, 256  ;;  %v1886_v57 = vsub.f32 %v1670_v44, %v271_v50  ;;  %v1892_v59 = vsub.f32 %v1672_v45, %v336_v51 }
 0x162   :  { %vm575_vm3 = vcmp.lt.s32.totalorder %v473_v29, %v474_v32 }
 0x163   :  { %v1860_v35 = vsel %vm575_vm3, %v473_v29, %v474_v32 }
 0x164   :  { %v578_v36 = vshra.s32 %v1860_v35, 16 }
 0x166   :  { %v1865_v15 = vcvt.s32.f32 %v578_v36 }
 0x167   :  { %v403_v38 = vpop.xlane.xlu0 %402 }
 0x168   :  { %vm443_vm4 = vcmp.le.f32.partialorder %v1748_v19, %v403_v38  ;;  %vm444_vm5 = vcmp.le.f32.partialorder %v1751_v20, %v403_v38  ;;  %581 = vmin.xlane.f32.xlu2 %v1865_v15  ;;  %420 = vmin.xlane.f32.xlu1 %v419_v14  ;;  %v422_v19 = vmin.f32 %v1868_v40, %v1874_v43  ;;  %v274_v5 = vpop.f32.mrf.mxu0  ;;  %v545_v38 = vand.u32 65535, %v1824_v7 }
 0x169   :  { %v475_v46 = vsel %vm443_vm4, %v1763_v30, 256  ;;  %v476_v47 = vsel %vm444_vm5, %v1766_v31, 256  ;;  %v1905_v8 = vsub.f32 %v1670_v44, %v274_v5  ;;  %v513_v44 = vand.u32 65535, %v1788_v48 }
 0x16a   :  { %vm591_vm6 = vcmp.lt.s32.totalorder %v475_v46, %v476_v47  ;;  %v529_v48 = vand.u32 65535, %v1806_v58  ;;  %v547_v50 = vcvt.s32.f32 %v545_v38 }
 0x16b   :  { %v1878_v49 = vsel %vm591_vm6, %v475_v46, %v476_v47  ;;  %v515_v9 = vcvt.s32.f32 %v513_v44 }
 0x16c   :  { %v594_v53 = vshra.s32 %v1878_v49, 16  ;;  %v531_v34 = vcvt.s32.f32 %v529_v48 }
 0x16e   :  { %v1883_v20 = vcvt.s32.f32 %v594_v53 }
 0x16f   :  { %v406_v56 = vpop.xlane.xlu2 %405 }
 0x170   :  { %vm445_vm7 = vcmp.le.f32.partialorder %v1756_v24, %v406_v56  ;;  %vm446_vm8 = vcmp.le.f32.partialorder %v1759_v25, %v406_v56  ;;  %597 = vmin.xlane.f32.xlu2 %v1883_v20  ;;  %423 = vmin.xlane.f32.xlu1 %v422_v19  ;;  %v425_v24 = vmin.f32 %v1886_v57, %v1892_v59  ;;  %v339_v25 = vpop.f32.mrf.mxu1  ;;  %v561_v19 = vand.u32 65535, %v1842_v22 }
 0x171   :  { %v477_v60 = vsel %vm445_vm7, %v1763_v30, 256  ;;  %v478_v61 = vsel %vm446_vm8, %v1766_v31, 256  ;;  %v1908_v3 = vsub.f32 %v1672_v45, %v339_v25 }
 0x172   :  { %vm607_vm9 = vcmp.lt.s32.totalorder %v477_v60, %v478_v61 }
 0x173   :  { %v1896_v62 = vsel %vm607_vm9, %v477_v60, %v478_v61  ;;  %v428_v4 = vmin.f32 %v1905_v8, %v1908_v3  ;;  %v563_v61 = vcvt.s32.f32 %v561_v19 }
 0x174   :  { %v610_v0 = vshra.s32 %v1896_v62, 16 }
 0x176   :  { %v1901_v6 = vcvt.s32.f32 %v610_v0 }
 0x178   :  { %613 = vmin.xlane.f32.xlu2 %v1901_v6  ;;  %426 = vmin.xlane.f32.xlu1 %v425_v24  ;;  %v577_v24 = vand.u32 65535, %v1860_v35 }
 0x180   :  { %429 = vmin.xlane.f32.xlu1 %v428_v4  ;;  %v579_v4 = vcvt.s32.f32 %v577_v24 }
 0x1b3   :  { %v1913_v16 = vpop.xlane.xlu1 %501 }
 0x1b4   :  { %vm503_vm10 = vcmp.eq.f32.partialorder %v1775_v39, %v1913_v16 }
 0x1b5   :  { %v504_v21 = vsel %vm503_vm10, %v499_v18, inf }
 0x1b6   :  { %505 = vmin.xlane.f32.xlu0 %v504_v21 }
 0x1bb   :  { %v1918_v23 = vpop.xlane.xlu0 %517  ;;  %v409_v45 = vpop.xlane.xlu1 %408 }
 0x1bc   :  { %vm447_vm11 = vcmp.le.f32.partialorder %v1781_v41, %v409_v45  ;;  %vm448_vm12 = vcmp.le.f32.partialorder %v1784_v42, %v409_v45  ;;  %vm519_vm13 = vcmp.eq.f32.partialorder %v1793_v52, %v1918_v23 }
 0x1bd   :  { %v479_v37 = vsel %vm447_vm11, %v1763_v30, 256  ;;  %v480_v10 = vsel %vm448_vm12, %v1766_v31, 256  ;;  %v520_v39 = vsel %vm519_vm13, %v515_v9, inf }
 0x1be   :  { %vm623_vm14 = vcmp.lt.s32.totalorder %v479_v37, %v480_v10  ;;  %521 = vmin.xlane.f32.xlu0 %v520_v39  ;;  %v609_v39 = vand.u32 65535, %v1896_v62 }
 0x1bf   :  { %v1926_v29 = vsel %vm623_vm14, %v479_v37, %v480_v10 }
 0x1c0   :  { %v626_v32 = vshra.s32 %v1926_v29, 16 }
 0x1c2   :  { %v1930_v33 = vcvt.s32.f32 %v626_v32 }
 0x1c3   :  { %v1932_v41 = vpop.xlane.xlu2 %533  ;;  %v412_v42 = vpop.xlane.xlu0 %411 }
 0x1c4   :  { %vm449_vm15 = vcmp.le.f32.partialorder %v1796_v54, %v412_v42  ;;  %vm450_vm1 = vcmp.le.f32.partialorder %v1802_v55, %v412_v42  ;;  %629 = vmin.xlane.f32.xlu2 %v1930_v33  ;;  %vm535_vm2 = vcmp.eq.f32.partialorder %v1811_v63, %v1932_v41  ;;  %v611_v42 = vcvt.s32.f32 %v609_v39 }
 0x1c5   :  { %v481_v52 = vsel %vm449_vm15, %v1763_v30, 256  ;;  %v482_v58 = vsel %vm450_vm1, %v1766_v31, 256  ;;  %v536_v36 = vsel %vm535_vm2, %v531_v34, inf }
 0x1c6   :  { %vm639_vm3 = vcmp.lt.s32.totalorder %v481_v52, %v482_v58  ;;  %537 = vmin.xlane.f32.xlu0 %v536_v36 }
 0x1c7   :  { %v1941_v14 = vsel %vm639_vm3, %v481_v52, %v482_v58 }
 0x1c8   :  { %v642_v54 = vshra.s32 %v1941_v14, 16 }
 0x1ca   :  { %v1945_v46 = vcvt.s32.f32 %v642_v54 }
 0x1cb   :  { %v1947_v55 = vpop.xlane.xlu1 %549  ;;  %v415_v47 = vpop.xlane.xlu2 %414 }
 0x1cc   :  { %vm451_vm4 = vcmp.le.f32.partialorder %v1814_v1, %v415_v47  ;;  %vm452_vm5 = vcmp.le.f32.partialorder %v1820_v2, %v415_v47  ;;  %645 = vmin.xlane.f32.xlu2 %v1945_v46  ;;  %vm551_vm6 = vcmp.eq.f32.partialorder %v1829_v11, %v1947_v55 }
 0x1cd   :  { %v483_v63 = vsel %vm451_vm4, %v1763_v30, 256  ;;  %v484_v7 = vsel %vm452_vm5, %v1766_v31, 256  ;;  %v552_v51 = vsel %vm551_vm6, %v547_v50, inf }
 0x1ce   :  { %vm655_vm7 = vcmp.lt.s32.totalorder %v483_v63, %v484_v7  ;;  %553 = vmin.xlane.f32.xlu0 %v552_v51 }
 0x1cf   :  { %v1956_v53 = vsel %vm655_vm7, %v483_v63, %v484_v7  ;;  %v524_v63 = vcvt.f32.s32 %v1918_v23  ;;  %v1451_v7 = vmov 1.0   ;;  %v752_v23 = vadd.s32 4294967288, %v1763_v30 }
 0x1d0   :  { %v658_v1 = vshra.s32 %v1956_v53, 16 }
 0x1d2   :  { %v1960_v56 = vcvt.s32.f32 %v658_v1 }
 0x1d3   :  { %v1962_v2 = vpop.xlane.xlu0 %565  ;;  %v418_v60 = vpop.xlane.xlu1 %417 }
 0x1d4   :  { %vm453_vm8 = vcmp.le.f32.partialorder %v1832_v13, %v418_v60  ;;  %vm454_vm9 = vcmp.le.f32.partialorder %v1838_v17, %v418_v60  ;;  %661 = vmin.xlane.f32.xlu1 %v1960_v56  ;;  %vm567_vm10 = vcmp.eq.f32.partialorder %v1847_v26, %v1962_v2 }
 0x1d5   :  { %v485_v11 = vsel %vm453_vm8, %v1763_v30, 256  ;;  %v486_v22 = vsel %vm454_vm9, %v1766_v31, 256  ;;  %v568_v0 = vsel %vm567_vm10, %v563_v61, inf  ;;  %v625_v61 = vand.u32 65535, %v1926_v29 }
 0x1d6   :  { %vm671_vm11 = vcmp.lt.s32.totalorder %v485_v11, %v486_v22  ;;  %569 = vmin.xlane.f32.xlu0 %v568_v0 }
 0x1d7   :  { %v1972_v5 = vsel %vm671_vm11, %v485_v11, %v486_v22  ;;  %v627_v24 = vcvt.s32.f32 %v625_v61 }
 0x1d8   :  { %v674_v13 = vshra.s32 %v1972_v5, 16 }
 0x1da   :  { %v1981_v26 = vcvt.s32.f32 %v674_v13 }
 0x1db   :  { %v1975_v25 = vpop.xlane.xlu2 %581  ;;  %v421_v17 = vpop.xlane.xlu1 %420 }
 0x1dc   :  { %vm455_vm12 = vcmp.le.f32.partialorder %v1850_v27, %v421_v17  ;;  %vm456_vm13 = vcmp.le.f32.partialorder %v1856_v28, %v421_v17  ;;  %vm583_vm14 = vcmp.eq.f32.partialorder %v1865_v15, %v1975_v25  ;;  %v593_v27 = vand.u32 65535, %v1878_v49 }
 0x1dd   :  { %v487_v12 = vsel %vm455_vm12, %v1763_v30, 256  ;;  %v488_v35 = vsel %vm456_vm13, %v1766_v31, 256  ;;  %v584_v18 = vsel %vm583_vm14, %v579_v4, inf  ;;  %vm754_vm14 = vcmask 130112  }
 0x1de   :  { %vm687_vm15 = vcmp.lt.s32.totalorder %v487_v12, %v488_v35  ;;  %585 = vmin.xlane.f32.xlu2 %v584_v18  ;;  %677 = vmin.xlane.f32.xlu0 %v1981_v26  ;;  %v595_v45 = vcvt.s32.f32 %v593_v27  ;;  %v641_v18 = vand.u32 65535, %v1941_v14 }
 0x1df   :  { %v1986_v21 = vsel %vm687_vm15, %v487_v12, %v488_v35  ;;  %v756_v12 = vadd.s32 4294967280, %v1763_v30 }
 0x1e0   :  { %v690_v28 = vshra.s32 %v1986_v21, 16 }
 0x1e2   :  { %v1994_v9 = vcvt.s32.f32 %v690_v28 }
 0x1e3   :  { %v1990_v44 = vpop.xlane.xlu2 %597  ;;  %v424_v15 = vpop.xlane.xlu1 %423 }
 0x1e4   :  { %vm457_vm1 = vcmp.le.f32.partialorder %v1868_v40, %v424_v15  ;;  %vm458_vm2 = vcmp.le.f32.partialorder %v1874_v43, %v424_v15  ;;  %vm599_vm3 = vcmp.eq.f32.partialorder %v1883_v20, %v1990_v44  ;;  %v556_v15 = vcvt.f32.s32 %v1947_v55 }
 0x1e5   :  { %v489_v37 = vsel %vm457_vm1, %v1763_v30, 256  ;;  %v490_v10 = vsel %vm458_vm2, %v1766_v31, 256  ;;  %v600_v49 = vsel %vm599_vm3, %v595_v45, inf  ;;  %vm758_vm3 = vcmask 195712  }
 0x1e6   :  { %vm703_vm4 = vcmp.lt.s32.totalorder %v489_v37, %v490_v10  ;;  %693 = vmin.xlane.f32.xlu2 %v1994_v9  ;;  %601 = vmin.xlane.f32.xlu1 %v600_v49  ;;  %v557_v39 = vshll.u32 %v556_v15, 16 }
 0x1e7   :  { %v2002_v48 = vsel %vm703_vm4, %v489_v37, %v490_v10  ;;  %v643_v37 = vcvt.s32.f32 %v641_v18 }
 0x1e8   :  { %v706_v40 = vshra.s32 %v2002_v48, 16 }
 0x1ea   :  { %v2011_v20 = vcvt.s32.f32 %v706_v40  ;;  %v760_v40 = vadd.s32 4294967272, %v1763_v30 }
 0x1eb   :  { %v2005_v43 = vpop.xlane.xlu2 %613  ;;  %v427_v32 = vpop.xlane.xlu1 %426 }
 0x1ec   :  { %vm459_vm5 = vcmp.le.f32.partialorder %v1886_v57, %v427_v32  ;;  %vm460_vm6 = vcmp.le.f32.partialorder %v1892_v59, %v427_v32  ;;  %vm615_vm7 = vcmp.eq.f32.partialorder %v1901_v6, %v2005_v43  ;;  %v508_v59 = vcvt.f32.s32 %v1913_v16 }
 0x1ed   :  { %v491_v34 = vsel %vm459_vm5, %v1763_v30, 256  ;;  %v492_v62 = vsel %vm460_vm6, %v1766_v31, 256  ;;  %v616_v52 = vsel %vm615_vm7, %v611_v42, inf  ;;  %v525_v16 = vshll.u32 %v524_v63, 16 }
 0x1ee   :  { %vm719_vm8 = vcmp.lt.s32.totalorder %v491_v34, %v492_v62  ;;  %617 = vmin.xlane.f32.xlu0 %v616_v52  ;;  %709 = vmin.xlane.f32.xlu1 %v2011_v20  ;;  %v509_v38 = vshll.u32 %v508_v59, 16  ;;  %v657_v42 = vand.u32 65535, %v1956_v53  ;;  %vm762_vm7 = vcmask 261312  }
 0x1ef   :  { %v2016_v58 = vsel %vm719_vm8, %v491_v34, %v492_v62  ;;  %v572_v62 = vcvt.f32.s32 %v1962_v2  ;;  %v764_v2 = vadd.s32 4294967264, %v1763_v30  ;;  %v588_v63 = vcvt.f32.s32 %v1975_v25 }
 0x1f0   :  { %v722_v57 = vshra.s32 %v2016_v58, 16 }
 0x1f2   :  { %v2019_v36 = vcvt.s32.f32 %v722_v57  ;;  %v659_v57 = vcvt.s32.f32 %v657_v42 }
 0x1f3   :  { %v430_v47 = vpop.xlane.xlu1 %429 }
 0x1f4   :  { %vm461_vm11 = vcmp.le.f32.partialorder %v1905_v8, %v430_v47  ;;  %vm462_vm12 = vcmp.le.f32.partialorder %v1908_v3, %v430_v47  ;;  %v540_v8 = vcvt.f32.s32 %v1932_v41 }
 0x1f5   :  { %v493_v19 = vsel %vm461_vm11, %v1763_v30, 256  ;;  %v494_v1 = vsel %vm462_vm12, %v1766_v31, 256  ;;  %vm766_vm11 = vcmask 326912  }
 0x1f6   :  { %725 = vmin.xlane.f32.xlu0 %v2019_v36  ;;  %vm735_vm13 = vcmp.lt.s32.totalorder %v493_v19, %v494_v1  ;;  %v541_v4 = vshll.u32 %v540_v8, 16  ;;  %v604_v8 = vcvt.f32.s32 %v1990_v44 }
 0x1f7   :  { %v2044_v17 = vsel %vm735_vm13, %v493_v19, %v494_v1 }
 0x1f8   :  { %v738_v28 = vshra.s32 %v2044_v17, 16 }
 0x1fa   :  { %v2058_v14 = vcvt.s32.f32 %v738_v28 }
 0x229   :  { %v506_v6 = vpop.xlane.xlu0 %505 }
 0x22a   :  { %v507_v54 = vcvt.f32.s32 %v506_v6 }
 0x22c   :  { %v510_v50 = vadd.s32 %v509_v38, %v507_v54  ;;  %v573_v38 = vshll.u32 %v572_v62, 16  ;;  %v780_v62 = vadd.s32 4294967232, %v1763_v30 }
 0x22e   :  { %vm813_vm9 = vcmp.eq.s32.totalorder %v1763_v30, %v510_v50  ;;  %vm814_vm10 = vcmp.eq.s32.totalorder %v1766_v31, %v510_v50  ;;  %v751_v3 = vperm.slane %v510_v50, %v1763_v30  ;;  %v673_v50 = vand.u32 65535, %v1972_v5 }
 0x22f   :  { %1360 = vmatmul.msk.f32.vlgmr.msra.gmra.mxu2 %vm813_vm9, %v1451_v7  ;;  %1376 = vmatmul.msk.f32.vlgmr.msra.gmra.mxu3 %vm814_vm10, %v1451_v7 }
 0x230   :  { %v675_v1 = vcvt.s32.f32 %v673_v50  ;;  %v784_v50 = vadd.s32 4294967224, %v1763_v30 }
 0x231   :  { %v522_v51 = vpop.xlane.xlu0 %521 }
 0x232   :  { %v523_v60 = vcvt.f32.s32 %v522_v51 }
 0x234   :  { %v526_v11 = vadd.s32 %v525_v16, %v523_v60  ;;  %v768_v60 = vadd.s32 4294967256, %v1763_v30 }
 0x236   :  { %v753_v22 = vperm.slane %v526_v11, %v752_v23  ;;  %vm815_vm15 = vcmp.eq.s32.totalorder %v1763_v30, %v526_v11  ;;  %vm816_vm1 = vcmp.eq.s32.totalorder %v1766_v31, %v526_v11  ;;  %v589_v23 = vshll.u32 %v588_v63, 16 }
 0x237   :  { %1361 = vmatmul.msk.f32.gmra.mxu2 %vm815_vm15, %v1451_v7  ;;  %1377 = vmatmul.msk.f32.gmra.mxu3 %vm816_vm1, %v1451_v7  ;;  %v2040_v0 = vpop.xlane.xlu2 %629  ;;  %vm770_vm15 = vcmask 392512   ;;  %v689_v11 = vand.u32 65535, %v1986_v21 }
 0x238   :  { %v755_v29 = vsel %vm754_vm14, %v753_v22, %v751_v3  ;;  %vm631_vm2 = vcmp.eq.f32.partialorder %v1930_v33, %v2040_v0 }
 0x239   :  { %v538_v41 = vpop.xlane.xlu0 %537  ;;  %v632_v13 = vsel %vm631_vm2, %v627_v24, inf }
 0x23a   :  { %v539_v35 = vcvt.f32.s32 %v538_v41  ;;  %633 = vmin.xlane.f32.xlu2 %v632_v13  ;;  %v605_v41 = vshll.u32 %v604_v8, 16  ;;  %v772_v13 = vadd.s32 4294967248, %v1763_v30 }
 0x23c   :  { %v542_v27 = vadd.s32 %v541_v4, %v539_v35  ;;  %v620_v35 = vcvt.f32.s32 %v2005_v43 }
 0x23e   :  { %v757_v45 = vperm.slane %v542_v27, %v756_v12  ;;  %vm817_vm4 = vcmp.eq.s32.totalorder %v1763_v30, %v542_v27  ;;  %vm818_vm5 = vcmp.eq.s32.totalorder %v1766_v31, %v542_v27  ;;  %v705_v12 = vand.u32 65535, %v2002_v48 }
 0x23f   :  { %1362 = vmatmul.msk.f32.gmra.mxu2 %vm817_vm4, %v1451_v7  ;;  %1378 = vmatmul.msk.f32.gmra.mxu3 %vm818_vm5, %v1451_v7  ;;  %v2054_v33 = vpop.xlane.xlu2 %645  ;;  %vm774_vm4 = vcmask 458112  }
 0x240   :  { %v759_v10 = vsel %vm758_vm3, %v757_v45, %v755_v29  ;;  %vm647_vm6 = vcmp.eq.f32.partialorder %v1945_v46, %v2054_v33  ;;  %v691_v29 = vcvt.s32.f32 %v689_v11  ;;  %v707_v15 = vcvt.s32.f32 %v705_v12 }
 0x241   :  { %v554_v49 = vpop.xlane.xlu0 %553  ;;  %v648_v55 = vsel %vm647_vm6, %v643_v37, inf  ;;  %v621_v45 = vshll.u32 %v620_v35, 16  ;;  %v776_v37 = vadd.s32 4294967240, %v1763_v30 }
 0x242   :  { %v555_v32 = vcvt.f32.s32 %v554_v49  ;;  %649 = vmin.xlane.f32.xlu1 %v648_v55  ;;  %741 = vmin.xlane.f32.xlu2 %v2058_v14  ;;  %v721_v49 = vand.u32 65535, %v2016_v58  ;;  %v636_v58 = vcvt.f32.s32 %v2040_v0 }
 0x244   :  { %v558_v34 = vadd.s32 %v557_v39, %v555_v32  ;;  %v723_v32 = vcvt.s32.f32 %v721_v49 }
 0x246   :  { %v761_v52 = vperm.slane %v558_v34, %v760_v40  ;;  %vm819_vm8 = vcmp.eq.s32.totalorder %v1763_v30, %v558_v34  ;;  %vm820_vm9 = vcmp.eq.s32.totalorder %v1766_v31, %v558_v34  ;;  %v637_v34 = vshll.u32 %v636_v58, 16 }
 0x247   :  { %1363 = vmatmul.msk.f32.gmra.mxu2 %vm819_vm8, %v1451_v7  ;;  %1379 = vmatmul.msk.f32.gmra.mxu3 %vm820_vm9, %v1451_v7  ;;  %v2068_v46 = vpop.xlane.xlu1 %661  ;;  %vm778_vm8 = vcmask 523712  }
 0x248   :  { %v763_v59 = vsel %vm762_vm7, %v761_v52, %v759_v10  ;;  %vm663_vm10 = vcmp.eq.f32.partialorder %v1960_v56, %v2068_v46 }
 0x249   :  { %v570_v53 = vpop.xlane.xlu0 %569  ;;  %v664_v6 = vsel %vm663_vm10, %v659_v57, inf }
 0x24a   :  { %v571_v54 = vcvt.f32.s32 %v570_v53  ;;  %665 = vmin.xlane.f32.xlu0 %v664_v6  ;;  %v652_v53 = vcvt.f32.s32 %v2054_v33 }
 0x24c   :  { %v574_v47 = vadd.s32 %v573_v38, %v571_v54 }
 0x24e   :  { %v765_v16 = vperm.slane %v574_v47, %v764_v2  ;;  %vm821_vm12 = vcmp.eq.s32.totalorder %v1763_v30, %v574_v47  ;;  %vm822_vm13 = vcmp.eq.s32.totalorder %v1766_v31, %v574_v47  ;;  %v653_v47 = vshll.u32 %v652_v53, 16 }
 0x24f   :  { %1364 = vmatmul.msk.f32.gmra.mxu2 %vm821_vm12, %v1451_v7  ;;  %1380 = vmatmul.msk.f32.gmra.mxu3 %vm822_vm13, %v1451_v7  ;;  %vm782_vm12 = vcmask 589312  }
 0x250   :  { %v767_v56 = vsel %vm766_vm11, %v765_v16, %v763_v59  ;;  %v737_v59 = vand.u32 65535, %v2044_v17 }
 0x251   :  { %v586_v51 = vpop.xlane.xlu2 %585  ;;  %v2079_v19 = vpop.xlane.xlu0 %677 }
 0x252   :  { %v587_v5 = vcvt.f32.s32 %v586_v51  ;;  %vm679_vm14 = vcmp.eq.f32.partialorder %v1981_v26, %v2079_v19  ;;  %v739_v54 = vcvt.s32.f32 %v737_v59  ;;  %v1397_v51 = vld [vmem:[%s2246_s0] sm:$0xff] }
 0x253   :  { %v680_v25 = vsel %vm679_vm14, %v675_v1, inf }
 0x254   :  { %v590_v61 = vadd.s32 %v589_v23, %v587_v5  ;;  %681 = vmin.xlane.f32.xlu1 %v680_v25  ;;  %v668_v23 = vcvt.f32.s32 %v2068_v46  ;;  %v1398_v46 = vld [vmem:[%s2246_s0 + $0x8] sm:$0xff] }
 0x256   :  { %v769_v3 = vperm.slane %v590_v61, %v768_v60  ;;  %vm823_vm1 = vcmp.eq.s32.totalorder %v1763_v30, %v590_v61  ;;  %vm824_vm2 = vcmp.eq.s32.totalorder %v1766_v31, %v590_v61 }
 0x257   :  { %1365 = vmatmul.msk.f32.gmra.mxu2 %vm823_vm1, %v1451_v7  ;;  %1381 = vmatmul.msk.f32.gmra.mxu3 %vm824_vm2, %v1451_v7  ;;  %vm786_vm1 = vcmask 654912  }
 0x258   :  { %v771_v22 = vsel %vm770_vm15, %v769_v3, %v767_v56 }
 0x259   :  { %v2090_v24 = vpop.xlane.xlu2 %693  ;;  %v602_v26 = vpop.xlane.xlu1 %601 }
 0x25a   :  { %v603_v21 = vcvt.f32.s32 %v602_v26  ;;  %vm695_vm3 = vcmp.eq.f32.partialorder %v1994_v9, %v2090_v24  ;;  %v788_v26 = vadd.s32 4294967216, %v1763_v30 }
 0x25b   :  { %v696_v44 = vsel %vm695_vm3, %v691_v29, inf }
 0x25c   :  { %v606_v4 = vadd.s32 %v605_v41, %v603_v21  ;;  %697 = vmin.xlane.f32.xlu2 %v696_v44 }
 0x25e   :  { %v773_v18 = vperm.slane %v606_v4, %v772_v13  ;;  %vm825_vm5 = vcmp.eq.s32.totalorder %v1763_v30, %v606_v4  ;;  %vm826_vm6 = vcmp.eq.s32.totalorder %v1766_v31, %v606_v4 }
 0x25f   :  { %1366 = vmatmul.msk.f32.gmra.mxu2 %vm825_vm5, %v1451_v7  ;;  %1382 = vmatmul.msk.f32.gmra.mxu3 %vm826_vm6, %v1451_v7 }
 0x260   :  { %v775_v27 = vsel %vm774_vm4, %v773_v18, %v771_v22  ;;  %v669_v22 = vshll.u32 %v668_v23, 16  ;;  %vm790_vm4 = vcmask 720512   ;;  %v804_v23 = vadd.s32 4294967184, %v1763_v30 }
 0x261   :  { %v618_v28 = vpop.xlane.xlu0 %617  ;;  %v2101_v9 = vpop.xlane.xlu1 %709 }
 0x262   :  { %v619_v48 = vcvt.f32.s32 %v618_v28  ;;  %vm711_vm7 = vcmp.eq.f32.partialorder %v2011_v20, %v2101_v9  ;;  %v684_v28 = vcvt.f32.s32 %v2079_v19  ;;  %v716_v53 = vcvt.f32.s32 %v2101_v9 }
 0x263   :  { %v712_v43 = vsel %vm711_vm7, %v707_v15, inf  ;;  %vm794_vm7 = vcmask 786112  }
 0x264   :  { %v622_v10 = vadd.s32 %v621_v45, %v619_v48  ;;  %713 = vmin.xlane.f32.xlu0 %v712_v43  ;;  %v792_v48 = vadd.s32 4294967208, %v1763_v30 }
 0x266   :  { %v777_v55 = vperm.slane %v622_v10, %v776_v37  ;;  %vm827_vm9 = vcmp.eq.s32.totalorder %v1763_v30, %v622_v10  ;;  %vm828_vm10 = vcmp.eq.s32.totalorder %v1766_v31, %v622_v10  ;;  %v685_v37 = vshll.u32 %v684_v28, 16 }
 0x267   :  { %1367 = vmatmul.msk.f32.gmra.mxu2 %vm827_vm9, %v1451_v7  ;;  %1383 = vmatmul.msk.f32.gmra.mxu3 %vm828_vm10, %v1451_v7  ;;  %vm798_vm10 = vcmask 851712  }
 0x268   :  { %v779_v39 = vsel %vm778_vm8, %v777_v55, %v775_v27 }
 0x269   :  { %v2111_v40 = vpop.xlane.xlu0 %725 }
 0x26a   :  { %vm727_vm11 = vcmp.eq.f32.partialorder %v2019_v36, %v2111_v40 }
 0x26b   :  { %v728_v20 = vsel %vm727_vm11, %v723_v32, inf  ;;  %v700_v32 = vcvt.f32.s32 %v2090_v24 }
 0x26c   :  { %729 = vmin.xlane.f32.xlu1 %v728_v20 }
 0x2ad   :  { %v634_v42 = vpop.xlane.xlu2 %633 }
 0x2ae   :  { %v635_v52 = vcvt.f32.s32 %v634_v42  ;;  %v701_v42 = vshll.u32 %v700_v32, 16 }
 0x2b0   :  { %v638_v57 = vadd.s32 %v637_v34, %v635_v52  ;;  %v796_v34 = vadd.s32 4294967200, %v1763_v30 }
 0x2b2   :  { %v781_v6 = vperm.slane %v638_v57, %v780_v62  ;;  %v926_v38 = vpop.f32.mrf.mxu2  ;;  %v991_v2 = vpop.f32.mrf.mxu3  ;;  %vm829_vm13 = vcmp.eq.s32.totalorder %v1763_v30, %v638_v57  ;;  %vm830_vm14 = vcmp.eq.s32.totalorder %v1766_v31, %v638_v57 }
 0x2b3   :  { %v992_v36 = vadd.f32 %v991_v2, %v926_v38  ;;  %1368 = vmatmul.msk.f32.gmra.mxu2 %vm829_vm13, %v1451_v7  ;;  %1384 = vmatmul.msk.f32.gmra.mxu3 %vm830_vm14, %v1451_v7  ;;  %vm802_vm13 = vcmask 917312  }
 0x2b4   :  { %v783_v0 = vsel %vm782_vm12, %v781_v6, %v779_v39 }
 0x2b5   :  { %1039 = vst.msk [vmem:[%s2249_s3] sm:$0xff] %vm67_vm0, %v992_v36  ;;  %v2127_v17 = vpop.xlane.xlu2 %741  ;;  %v650_v33 = vpop.xlane.xlu1 %649  ;;  %v1106_v1 = vsub.f32 %v992_v36, %v1397_v51  ;;  %v717_v36 = vshll.u32 %v716_v53, 16 }
 0x2b6   :  { %v651_v63 = vcvt.f32.s32 %v650_v33  ;;  %vm743_vm15 = vcmp.eq.f32.partialorder %v2058_v14, %v2127_v17 }
 0x2b7   :  { %v744_v16 = vsel %vm743_vm15, %v739_v54, inf  ;;  %v1170_v11 = vmul.f32 %v1106_v1, %v1106_v1 }
 0x2b8   :  { %v654_v56 = vadd.s32 %v653_v47, %v651_v63  ;;  %745 = vmin.xlane.f32.xlu2 %v744_v16  ;;  %v732_v63 = vcvt.f32.s32 %v2111_v40 }
 0x2b9   :  { %v1186_v21 = vsel %vm67_vm0, %v1170_v11, 0.0 }
 0x2ba   :  { %v785_v60 = vperm.slane %v654_v56, %v784_v50  ;;  %v929_v5 = vpop.f32.mrf.mxu2  ;;  %v994_v25 = vpop.f32.mrf.mxu3  ;;  %vm831_vm2 = vcmp.eq.s32.totalorder %v1763_v30, %v654_v56  ;;  %vm832_vm3 = vcmp.eq.s32.totalorder %v1766_v31, %v654_v56  ;;  %v733_v1 = vshll.u32 %v732_v63, 16 }
 0x2bb   :  { %v995_v61 = vadd.f32 %v994_v25, %v929_v5  ;;  %1369 = vmatmul.msk.f32.gmra.mxu2 %vm831_vm2, %v1451_v7  ;;  %1385 = vmatmul.msk.f32.gmra.mxu3 %vm832_vm3, %v1451_v7 }
 0x2bc   :  { %v787_v14 = vsel %vm786_vm1, %v785_v60, %v783_v0  ;;  %v800_v0 = vadd.s32 4294967192, %v1763_v30  ;;  %vm806_vm1 = vcmask 982912  }
 0x2bd   :  { %1040 = vst.msk [vmem:[%s2249_s3 + $0x8] sm:$0xff] %vm67_vm0, %v995_v61  ;;  %v1107_v8 = vsub.f32 %v995_v61, %v1398_v46  ;;  %v666_v3 = vpop.xlane.xlu0 %665 }
 0x2be   :  { %v667_v29 = vcvt.f32.s32 %v666_v3 }
 0x2bf   :  { %v1171_v41 = vmul.f32 %v1107_v8, %v1107_v8 }
 0x2c0   :  { %v670_v13 = vadd.s32 %v669_v22, %v667_v29  ;;  %v748_v22 = vcvt.f32.s32 %v2127_v17 }
 0x2c1   :  { %v1187_v44 = vsel %vm67_vm0, %v1171_v41, 0.0  ;;  %v808_v41 = vadd.s32 4294967176, %v1763_v30 }
 0x2c2   :  { %v789_v4 = vperm.slane %v670_v13, %v788_v26  ;;  %v932_v12 = vpop.f32.mrf.mxu2  ;;  %v997_v35 = vpop.f32.mrf.mxu3  ;;  %vm833_vm5 = vcmp.eq.s32.totalorder %v1763_v30, %v670_v13  ;;  %vm834_vm6 = vcmp.eq.s32.totalorder %v1766_v31, %v670_v13  ;;  %v1188_v18 = vadd.f32 %v1187_v44, %v1186_v21 }
 0x2c3   :  { %v998_v27 = vadd.f32 %v997_v35, %v932_v12  ;;  %1370 = vmatmul.msk.f32.gmra.mxu2 %vm833_vm5, %v1451_v7  ;;  %1386 = vmatmul.msk.f32.gmra.mxu3 %vm834_vm6, %v1451_v7  ;;  %v749_v29 = vshll.u32 %v748_v22, 16 }
 0x2c4   :  { %v791_v15 = vsel %vm790_vm4, %v789_v4, %v787_v14  ;;  %1217 = vadd.xlane.f32.xlu0 %v1188_v18  ;;  %vm810_vm4 = vcmask 1048512  }
 0x2c5   :  { %1041 = vst.msk [vmem:[%s2249_s3 + $0x10] sm:$0xff] %vm67_vm0, %v998_v27 }
 0x2c7   :  { %v682_v45 = vpop.xlane.xlu1 %681 }
 0x2c8   :  { %v683_v43 = vcvt.f32.s32 %v682_v45 }
 0x2ca   :  { %v686_v10 = vadd.s32 %v685_v37, %v683_v43  ;;  %v935_v49 = vpop.f32.mrf.mxu2  ;;  %v1000_v55 = vpop.f32.mrf.mxu3 }
 0x2cb   :  { %v1001_v39 = vadd.f32 %v1000_v55, %v935_v49 }
 0x2cc   :  { %v793_v19 = vperm.slane %v686_v10, %v792_v48  ;;  %vm835_vm8 = vcmp.eq.s32.totalorder %v1763_v30, %v686_v10  ;;  %vm836_vm9 = vcmp.eq.s32.totalorder %v1766_v31, %v686_v10 }
 0x2cd   :  { %1042 = vst.msk [vmem:[%s2249_s3 + $0x18] sm:$0xff] %vm67_vm0, %v1001_v39  ;;  %1371 = vmatmul.msk.f32.gmra.mxu2 %vm835_vm8, %v1451_v7  ;;  %1387 = vmatmul.msk.f32.gmra.mxu3 %vm836_vm9, %v1451_v7 }
 0x2ce   :  { %v795_v20 = vsel %vm794_vm7, %v793_v19, %v791_v15 }
 0x2cf   :  { %v698_v58 = vpop.xlane.xlu2 %697 }
 0x2d0   :  { %v699_v24 = vcvt.f32.s32 %v698_v58 }
 0x2d2   :  { %v702_v62 = vadd.s32 %v701_v42, %v699_v24  ;;  %v938_v52 = vpop.f32.mrf.mxu2  ;;  %v1003_v57 = vpop.f32.mrf.mxu3 }
 0x2d3   :  { %v1004_v59 = vadd.f32 %v1003_v57, %v938_v52 }
 0x2d4   :  { %v797_v6 = vperm.slane %v702_v62, %v796_v34  ;;  %vm837_vm11 = vcmp.eq.s32.totalorder %v1763_v30, %v702_v62  ;;  %vm838_vm12 = vcmp.eq.s32.totalorder %v1766_v31, %v702_v62 }
 0x2d5   :  { %1043 = vst.msk [vmem:[%s2249_s3 + $0x20] sm:$0xff] %vm67_vm0, %v1004_v59  ;;  %1372 = vmatmul.msk.f32.gmra.mxu2 %vm837_vm11, %v1451_v7  ;;  %1388 = vmatmul.msk.f32.gmra.mxu3 %vm838_vm12, %v1451_v7 }
 0x2d6   :  { %v799_v38 = vsel %vm798_vm10, %v797_v6, %v795_v20 }
 0x2d7   :  { %v714_v2 = vpop.xlane.xlu0 %713 }
 0x2d8   :  { %v715_v9 = vcvt.f32.s32 %v714_v2 }
 0x2da   :  { %v718_v33 = vadd.s32 %v717_v36, %v715_v9  ;;  %v941_v54 = vpop.f32.mrf.mxu2  ;;  %v1006_v47 = vpop.f32.mrf.mxu3 }
 0x2db   :  { %v1007_v50 = vadd.f32 %v1006_v47, %v941_v54 }
 0x2dc   :  { %v801_v16 = vperm.slane %v718_v33, %v800_v0  ;;  %vm839_vm14 = vcmp.eq.s32.totalorder %v1763_v30, %v718_v33  ;;  %vm840_vm15 = vcmp.eq.s32.totalorder %v1766_v31, %v718_v33 }
 0x2dd   :  { %1044 = vst.msk [vmem:[%s2249_s3 + $0x28] sm:$0xff] %vm67_vm0, %v1007_v50  ;;  %1373 = vmatmul.msk.f32.gmra.mxu2 %vm839_vm14, %v1451_v7  ;;  %1389 = vmatmul.msk.f32.gmra.mxu3 %vm840_vm15, %v1451_v7 }
 0x2de   :  { %v803_v56 = vsel %vm802_vm13, %v801_v16, %v799_v38 }
 0x2df   :  { %v730_v51 = vpop.xlane.xlu1 %729 }
 0x2e0   :  { %v731_v40 = vcvt.f32.s32 %v730_v51 }
 0x2e2   :  { %v734_v60 = vadd.s32 %v733_v1, %v731_v40  ;;  %v944_v5 = vpop.f32.mrf.mxu2  ;;  %v1009_v25 = vpop.f32.mrf.mxu3 }
 0x2e3   :  { %v1010_v61 = vadd.f32 %v1009_v25, %v944_v5 }
 0x2e4   :  { %v805_v14 = vperm.slane %v734_v60, %v804_v23  ;;  %vm841_vm2 = vcmp.eq.s32.totalorder %v1763_v30, %v734_v60  ;;  %vm842_vm3 = vcmp.eq.s32.totalorder %v1766_v31, %v734_v60 }
 0x2e5   :  { %1045 = vst.msk [vmem:[%s2249_s3 + $0x30] sm:$0xff] %vm67_vm0, %v1010_v61  ;;  %1374 = vmatmul.msk.f32.gmra.mxu2 %vm841_vm2, %v1451_v7  ;;  %1390 = vmatmul.msk.f32.gmra.mxu3 %vm842_vm3, %v1451_v7 }
 0x2e6   :  { %v807_v11 = vsel %vm806_vm1, %v805_v14, %v803_v56 }
 0x2ea   :  { %v947_v46 = vpop.f32.mrf.mxu2  ;;  %v1012_v8 = vpop.f32.mrf.mxu3 }
 0x2eb   :  { %v1013_v3 = vadd.f32 %v1012_v8, %v947_v46 }
 0x2ed   :  { %1046 = vst.msk [vmem:[%s2249_s3 + $0x38] sm:$0xff] %vm67_vm0, %v1013_v3 }
 0x32b   :  { %v746_v26 = vpop.xlane.xlu2 %745 }
 0x32c   :  { %v747_v13 = vcvt.f32.s32 %v746_v26 }
 0x32e   :  { %v750_v21 = vadd.s32 %v749_v29, %v747_v13 }
 0x330   :  { %v809_v44 = vperm.slane %v750_v21, %v808_v41  ;;  %vm843_vm5 = vcmp.eq.s32.totalorder %v1763_v30, %v750_v21  ;;  %vm844_vm6 = vcmp.eq.s32.totalorder %v1766_v31, %v750_v21 }
 0x331   :  { %1375 = vmatmul.msk.f32.gmra.mxu2 %vm843_vm5, %v1451_v7  ;;  %1391 = vmatmul.msk.f32.gmra.mxu3 %vm844_vm6, %v1451_v7 }
 0x332   :  { %v811_v4 = vsel %vm810_vm4, %v809_v44, %v807_v11 }
 0x333   :  { %812 = vst [vmem:[#allocation2] sm:$0x1] %v811_v4 }
 0x334   :  { %1240 = dma.vmem_to_hbm [thread:$0]  %s1236_s1, 16, %s1238_s9, [#allocation3]  }
 0x336   :  { %v950_v17 = vpop.f32.mrf.mxu2  ;;  %v1015_v12 = vpop.f32.mrf.mxu3 }
 0x337   :  { %v1016_v35 = vadd.f32 %v1015_v12, %v950_v17  ;;  %v1218_v30 = vpop.xlane.xlu0 %1217 }
 0x338   :  { %v1219_v31 = vrot.slane %v1218_v30, 4 }
 0x339   :  { %1047 = vst.msk [vmem:[%s2249_s3 + $0x40] sm:$0xff] %vm67_vm0, %v1016_v35 }
 0x33a   :  { %v1220_v7 = vadd.f32 %v1219_v31, %v1218_v30 }
 0x33c   :  { %v1221_v18 = vrot.slane %v1220_v7, 2 }
 0x33e   :  { %v953_v27 = vpop.f32.mrf.mxu2  ;;  %v1018_v28 = vpop.f32.mrf.mxu3  ;;  %v1222_v15 = vadd.f32 %v1221_v18, %v1220_v7 }
 0x33f   :  { %v1019_v45 = vadd.f32 %v1018_v28, %v953_v27 }
 0x340   :  { %v1223_v37 = vrot.slane %v1222_v15, 1 }
 0x341   :  { %1048 = vst.msk [vmem:[%s2249_s3 + $0x48] sm:$0xff] %vm67_vm0, %v1019_v45 }
 0x342   :  { %v1224_v48 = vadd.f32 %v1223_v37, %v1222_v15 }
 0x344   :  { %1392 = vpush %v1224_v48 }
 0x346   :  { %v956_v43 = vpop.f32.mrf.mxu2  ;;  %v1021_v10 = vpop.f32.mrf.mxu3 }
 0x347   :  { %v1022_v49 = vadd.f32 %v1021_v10, %v956_v43 }
 0x349   :  { %1049 = vst.msk [vmem:[%s2249_s3 + $0x50] sm:$0xff] %vm67_vm0, %v1022_v49 }
 0x350   :  { %v959_v55 = vpop.f32.mrf.mxu2  ;;  %v1024_v39 = vpop.f32.mrf.mxu3 }
 0x351   :  { %v1025_v32 = vadd.f32 %v1024_v39, %v959_v55 }
 0x353   :  { %1050 = vst.msk [vmem:[%s2249_s3 + $0x58] sm:$0xff] %vm67_vm0, %v1025_v32 }
 0x358   :  { %v962_v19 = vpop.f32.mrf.mxu2  ;;  %v1027_v20 = vpop.f32.mrf.mxu3 }
 0x359   :  { %v1028_v58 = vadd.f32 %v1027_v20, %v962_v19 }
 0x35b   :  { %1051 = vst.msk [vmem:[%s2249_s3 + $0x60] sm:$0xff] %vm67_vm0, %v1028_v58 }
 0x360   :  { %v965_v42 = vpop.f32.mrf.mxu2  ;;  %v1030_v34 = vpop.f32.mrf.mxu3 }
 0x361   :  { %v1031_v24 = vadd.f32 %v1030_v34, %v965_v42 }
 0x363   :  { %1052 = vst.msk [vmem:[%s2249_s3 + $0x68] sm:$0xff] %vm67_vm0, %v1031_v24 }
 0x368   :  { %v968_v62 = vpop.f32.mrf.mxu2  ;;  %v1033_v52 = vpop.f32.mrf.mxu3 }
 0x369   :  { %v1034_v57 = vadd.f32 %v1033_v52, %v968_v62 }
 0x36b   :  { %1053 = vst.msk [vmem:[%s2249_s3 + $0x70] sm:$0xff] %vm67_vm0, %v1034_v57 }
 0x375   :  { %s1393_s27 = spop %1392 }
 0x376   :  { %v1226_v59 = vstv %s1393_s27 }
 0x377   :  { %1227 = vst [vmem:[#allocation4] sm:$0x1] %v1226_v59 }
 0x378   :  { %1251 = dma.vmem_to_hbm [thread:$0]  %s1247_s23, 16, %s1249_s26, [#allocation5]  }
 0x3b4   :  { %v971_v53 = vpop.f32.mrf.mxu2  ;;  %v1036_v6 = vpop.f32.mrf.mxu3 }
 0x3b5   :  { %v1037_v38 = vadd.f32 %v1036_v6, %v971_v53 }
 0x3b7   :  { %1054 = vst.msk [vmem:[%s2249_s3 + $0x78] sm:$0xff] %vm67_vm0, %v1037_v38 }
 0x3b8   :  { %1447 = dma.done.wait [#allocation3], 16  }
 0x3b9   :  { %1448 = vsyncadd [#allocation3], 4294967280 }
 0x3ba   :  { %1449 = dma.done.wait [#allocation5], 16  }
 0x3bb   :  { %1450 = vsyncadd [#allocation5], 4294967280 }
 0x3bc   :  { %1262 = vsyncpa [#allocation3], 1 }
 0x3bd   :  { %1263 = vsyncpa [#allocation5], 1 }

// kernel: tpu_custom_call.1
= control target key start
LH: loop header
LB: loop body
LE: loop exit
PB: predicated region body
PF: predicated region fallthrough
CT: control target
= control target key end

     0   :  { %11 = vsyncpa [#allocation3], 0  ;;  %vm67_vm0 = vcmask 261120   ;;  %s2246_s0 = inlined_call_operand.vmem [shape: f32[128,32], index: 0, kind: input, shape index: {}]   ;;  %s2247_s1 = inlined_call_operand.vmem [shape: f32[256,32], index: 1, kind: input, shape index: {}]   ;;  %s2248_s2 = inlined_call_operand.vmem [shape: f32[1,256], index: 2, kind: input, shape index: {}]   ;;  %s2249_s3 = inlined_call_operand.vmem [shape: f32[128,32], index: 3, kind: output, shape index: {0}]   ;;  %s2250_s4 = inlined_call_operand.hbm [shape: s32[1,128], index: 4, kind: output, shape index: {1}]   ;;  %s2251_s5 = inlined_call_operand.hbm [shape: f32[1,128], index: 5, kind: output, shape index: {2}]  }
   0x1   :  { %v50_v0 = vld [vmem:[%s2247_s1 + $0x78] sm:$0xff]  ;;  %v49_v2 = vld [vmem:[%s2247_s1 + $0x70] sm:$0xff]  ;;  %v48_v4 = vld [vmem:[%s2247_s1 + $0x68] sm:$0xff] }
   0x2   :  { %v66_v1 = vld [vmem:[%s2247_s1 + $0xf8] sm:$0xff]  ;;  %1264 = vmatpush.xpose.msk.msra.mxu0 %vm67_vm0, %v50_v0  ;;  %v65_v3 = vld [vmem:[%s2247_s1 + $0xf0] sm:$0xff]  ;;  %909 = vmatpush.msra.mxu2 %v50_v0  ;;  %v64_v5 = vld [vmem:[%s2247_s1 + $0xe8] sm:$0xff] }
   0x3   :  { %1296 = vmatpush.xpose.msk.msra.mxu1 %vm67_vm0, %v66_v1  ;;  %974 = vmatpush.msra.mxu3 %v66_v1  ;;  %v47_v6 = vld [vmem:[%s2247_s1 + $0x60] sm:$0xff] }
   0x4   :  { %910 = vmatpush.msra.mxu2 %v49_v2  ;;  %v63_v7 = vld [vmem:[%s2247_s1 + $0xe0] sm:$0xff] }
   0x5   :  { %975 = vmatpush.msra.mxu3 %v65_v3 }
   0x6   :  { %1265 = vmatpush.xpose.msk.msra.mxu0 %vm67_vm0, %v49_v2  ;;  %911 = vmatpush.msra.mxu2 %v48_v4 }
   0x7   :  { %1297 = vmatpush.xpose.msk.msra.mxu1 %vm67_vm0, %v65_v3  ;;  %976 = vmatpush.msra.mxu3 %v64_v5 }
   0x8   :  { %12 = vsyncpa [#allocation5], 0  ;;  %912 = vmatpush.msra.mxu2 %v47_v6  ;;  %v46_v8 = vld [vmem:[%s2247_s1 + $0x58] sm:$0xff]  ;;  %v45_v10 = vld [vmem:[%s2247_s1 + $0x50] sm:$0xff]  ;;  %s1237_s9 = sshll.u32 %s2250_s4, 4  ;;  %s1453_s22 = smov [#allocation4]   ;;  %s1238_s9 = int_to_ptr.hbm [resolvable:$true] %s1237_s9 }
   0x9   :  { %977 = vmatpush.msra.mxu3 %v63_v7  ;;  %v62_v9 = vld [vmem:[%s2247_s1 + $0xd8] sm:$0xff]  ;;  %v61_v11 = vld [vmem:[%s2247_s1 + $0xd0] sm:$0xff]  ;;  %v44_v12 = vld [vmem:[%s2247_s1 + $0x48] sm:$0xff]  ;;  %s1246_s23 = sshll.u32 %s1453_s22, 4  ;;  %s1248_s26 = sshll.u32 %s2251_s5, 4  ;;  %s1247_s23 = int_to_ptr.vmem [resolvable:$true] %s1246_s23  ;;  %s1249_s26 = int_to_ptr.hbm [resolvable:$true] %s1248_s26 }
   0xa   :  { %1266 = vmatpush.xpose.msk.msra.mxu0 %vm67_vm0, %v48_v4  ;;  %913 = vmatpush.msra.mxu2 %v46_v8  ;;  %v60_v13 = vld [vmem:[%s2247_s1 + $0xc8] sm:$0xff]  ;;  %v43_v14 = vld [vmem:[%s2247_s1 + $0x40] sm:$0xff]  ;;  %v42_v16 = vld [vmem:[%s2247_s1 + $0x38] sm:$0xff] }
   0xb   :  { %1298 = vmatpush.xpose.msk.msra.mxu1 %vm67_vm0, %v64_v5  ;;  %978 = vmatpush.msra.mxu3 %v62_v9  ;;  %v59_v15 = vld [vmem:[%s2247_s1 + $0xc0] sm:$0xff]  ;;  %v58_v17 = vld [vmem:[%s2247_s1 + $0xb8] sm:$0xff]  ;;  %v41_v18 = vld [vmem:[%s2247_s1 + $0x30] sm:$0xff] }
   0xc   :  { %914 = vmatpush.msra.mxu2 %v45_v10  ;;  %v57_v19 = vld [vmem:[%s2247_s1 + $0xb0] sm:$0xff]  ;;  %v40_v20 = vld [vmem:[%s2247_s1 + $0x28] sm:$0xff]  ;;  %v39_v22 = vld [vmem:[%s2247_s1 + $0x20] sm:$0xff] }
   0xd   :  { %979 = vmatpush.msra.mxu3 %v61_v11  ;;  %v56_v21 = vld [vmem:[%s2247_s1 + $0xa8] sm:$0xff]  ;;  %v55_v23 = vld [vmem:[%s2247_s1 + $0xa0] sm:$0xff]  ;;  %v38_v24 = vld [vmem:[%s2247_s1 + $0x18] sm:$0xff] }
   0xe   :  { %1267 = vmatpush.xpose.msk.msra.mxu0 %vm67_vm0, %v47_v6  ;;  %915 = vmatpush.msra.mxu2 %v44_v12  ;;  %v54_v25 = vld [vmem:[%s2247_s1 + $0x98] sm:$0xff]  ;;  %v37_v26 = vld [vmem:[%s2247_s1 + $0x10] sm:$0xff]  ;;  %v36_v28 = vld [vmem:[%s2247_s1 + $0x8] sm:$0xff] }
   0xf   :  { %1299 = vmatpush.xpose.msk.msra.mxu1 %vm67_vm0, %v63_v7  ;;  %980 = vmatpush.msra.mxu3 %v60_v13  ;;  %v53_v27 = vld [vmem:[%s2247_s1 + $0x90] sm:$0xff]  ;;  %v52_v29 = vld [vmem:[%s2247_s1 + $0x88] sm:$0xff]  ;;  %v35_v30 = vld [vmem:[%s2247_s1] sm:$0xff] }
  0x10   :  { %916 = vmatpush.msra.mxu2 %v43_v14  ;;  %v51_v31 = vld [vmem:[%s2247_s1 + $0x80] sm:$0xff]  ;;  %v20_v33 = vld [vmem:[%s2246_s0 + $0x8] sm:$0xff]  ;;  %v21_v34 = vld [vmem:[%s2246_s0 + $0x10] sm:$0xff] }
  0x11   :  { %981 = vmatpush.msra.mxu3 %v59_v15  ;;  %v19_v32 = vld [vmem:[%s2246_s0] sm:$0xff]  ;;  %v22_v35 = vld [vmem:[%s2246_s0 + $0x18] sm:$0xff]  ;;  %v24_v37 = vld [vmem:[%s2246_s0 + $0x28] sm:$0xff] }
  0x12   :  { %1268 = vmatpush.xpose.msk.msra.mxu0 %vm67_vm0, %v46_v8  ;;  %917 = vmatpush.msra.mxu2 %v42_v16  ;;  %v23_v36 = vld [vmem:[%s2246_s0 + $0x20] sm:$0xff]  ;;  %v25_v38 = vld [vmem:[%s2246_s0 + $0x30] sm:$0xff]  ;;  %v26_v39 = vld [vmem:[%s2246_s0 + $0x38] sm:$0xff] }
  0x13   :  { %1300 = vmatpush.xpose.msk.msra.mxu1 %vm67_vm0, %v62_v9  ;;  %982 = vmatpush.msra.mxu3 %v58_v17  ;;  %v27_v40 = vld [vmem:[%s2246_s0 + $0x40] sm:$0xff]  ;;  %v28_v41 = vld [vmem:[%s2246_s0 + $0x48] sm:$0xff]  ;;  %v29_v42 = vld [vmem:[%s2246_s0 + $0x50] sm:$0xff] }
  0x14   :  { %918 = vmatpush.msra.mxu2 %v41_v18  ;;  %v342_v43 = vld [vmem:[%s2248_s2] sm:$0x3]  ;;  %v30_v46 = vld [vmem:[%s2246_s0 + $0x58] sm:$0xff]  ;;  %v32_v58 = vld [vmem:[%s2246_s0 + $0x68] sm:$0xff]  ;;  %s1452_s2 = smov [#allocation2]  }
  0x15   :  { %983 = vmatpush.msra.mxu3 %v57_v19  ;;  %v1670_v44 = vperm.slane %v342_v43, 0  ;;  %v1672_v45 = vperm.slane %v342_v43, 1  ;;  %v31_v52 = vld [vmem:[%s2246_s0 + $0x60] sm:$0xff]  ;;  %v33_v0 = vld [vmem:[%s2246_s0 + $0x70] sm:$0xff]  ;;  %v34_v6 = vld [vmem:[%s2246_s0 + $0x78] sm:$0xff]  ;;  %s1235_s1 = sshll.u32 %s1452_s2, 4  ;;  %s1236_s1 = int_to_ptr.vmem [resolvable:$true] %s1235_s1 }
  0x16   :  { %1269 = vmatpush.xpose.msk.msra.mxu0 %vm67_vm0, %v45_v10  ;;  %919 = vmatpush.msra.mxu2 %v40_v20 }
  0x17   :  { %1301 = vmatpush.xpose.msk.msra.mxu1 %vm67_vm0, %v61_v11  ;;  %984 = vmatpush.msra.mxu3 %v56_v21 }
  0x18   :  { %920 = vmatpush.msra.mxu2 %v39_v22 }
  0x19   :  { %985 = vmatpush.msra.mxu3 %v55_v23 }
  0x1a   :  { %1270 = vmatpush.xpose.msk.msra.mxu0 %vm67_vm0, %v44_v12  ;;  %921 = vmatpush.msra.mxu2 %v38_v24 }
  0x1b   :  { %1302 = vmatpush.xpose.msk.msra.mxu1 %vm67_vm0, %v60_v13  ;;  %986 = vmatpush.msra.mxu3 %v54_v25 }
  0x1c   :  { %922 = vmatpush.msra.mxu2 %v37_v26 }
  0x1d   :  { %987 = vmatpush.msra.mxu3 %v53_v27 }
  0x1e   :  { %1271 = vmatpush.xpose.msk.msra.mxu0 %vm67_vm0, %v43_v14  ;;  %923 = vmatpush.msra.mxu2 %v36_v28 }
  0x1f   :  { %1303 = vmatpush.xpose.msk.msra.mxu1 %vm67_vm0, %v59_v15  ;;  %988 = vmatpush.msra.mxu3 %v52_v29 }
  0x20   :  { %924 = vmatpush.msra.mxu2 %v35_v30 }
  0x21   :  { %989 = vmatpush.msra.mxu3 %v51_v31 }
  0x22   :  { %1272 = vmatpush.xpose.msk.msra.mxu0 %vm67_vm0, %v42_v16 }
  0x23   :  { %1304 = vmatpush.xpose.msk.msra.mxu1 %vm67_vm0, %v58_v17 }
  0x26   :  { %1273 = vmatpush.xpose.msk.msra.mxu0 %vm67_vm0, %v41_v18 }
  0x27   :  { %1305 = vmatpush.xpose.msk.msra.mxu1 %vm67_vm0, %v57_v19 }
  0x2a   :  { %1274 = vmatpush.xpose.msk.msra.mxu0 %vm67_vm0, %v40_v20 }
  0x2b   :  { %1306 = vmatpush.xpose.msk.msra.mxu1 %vm67_vm0, %v56_v21 }
  0x2e   :  { %1275 = vmatpush.xpose.msk.msra.mxu0 %vm67_vm0, %v39_v22 }
  0x2f   :  { %1307 = vmatpush.xpose.msk.msra.mxu1 %vm67_vm0, %v55_v23 }
  0x32   :  { %1276 = vmatpush.xpose.msk.msra.mxu0 %vm67_vm0, %v38_v24 }
  0x33   :  { %1308 = vmatpush.xpose.msk.msra.mxu1 %vm67_vm0, %v54_v25 }
  0x36   :  { %1277 = vmatpush.xpose.msk.msra.mxu0 %vm67_vm0, %v37_v26 }
  0x37   :  { %1309 = vmatpush.xpose.msk.msra.mxu1 %vm67_vm0, %v53_v27  ;;  %v380_v27 = vlaneseq }
  0x3a   :  { %1278 = vmatpush.xpose.msk.msra.mxu0 %vm67_vm0, %v36_v28 }
  0x3b   :  { %1310 = vmatpush.xpose.msk.msra.mxu1 %vm67_vm0, %v52_v29 }
  0x3e   :  { %1279 = vmatpush.xpose.msk.msra.mxu0 %vm67_vm0, %v35_v30  ;;  %v1763_v30 = vand.u32 127, %v380_v27 }
  0x3f   :  { %1311 = vmatpush.xpose.msk.msra.mxu1 %vm67_vm0, %v51_v31 }
  0x40   :  { %v1766_v31 = vadd.s32 128, %v1763_v30 }
  0x41   :  { %1280 = vmatmul.msk.f32.vlgmr.msra.gmra.mxu0 %vm67_vm0, %v19_v32 }
  0x42   :  { %1312 = vmatmul.msk.f32.vlgmr.msra.gmra.mxu1 %vm67_vm0, %v19_v32 }
  0x49   :  { %1281 = vmatmul.msk.f32.gmra.mxu0 %vm67_vm0, %v20_v33 }
  0x4a   :  { %1313 = vmatmul.msk.f32.gmra.mxu1 %vm67_vm0, %v20_v33 }
  0x51   :  { %1282 = vmatmul.msk.f32.gmra.mxu0 %vm67_vm0, %v21_v34 }
  0x52   :  { %1314 = vmatmul.msk.f32.gmra.mxu1 %vm67_vm0, %v21_v34 }
  0x59   :  { %1283 = vmatmul.msk.f32.gmra.mxu0 %vm67_vm0, %v22_v35 }
  0x5a   :  { %1315 = vmatmul.msk.f32.gmra.mxu1 %vm67_vm0, %v22_v35 }
  0x61   :  { %1284 = vmatmul.msk.f32.gmra.mxu0 %vm67_vm0, %v23_v36 }
  0x62   :  { %1316 = vmatmul.msk.f32.gmra.mxu1 %vm67_vm0, %v23_v36 }
  0x69   :  { %1285 = vmatmul.msk.f32.gmra.mxu0 %vm67_vm0, %v24_v37 }
  0x6a   :  { %1317 = vmatmul.msk.f32.gmra.mxu1 %vm67_vm0, %v24_v37 }
  0x71   :  { %1286 = vmatmul.msk.f32.gmra.mxu0 %vm67_vm0, %v25_v38 }
  0x72   :  { %1318 = vmatmul.msk.f32.gmra.mxu1 %vm67_vm0, %v25_v38 }
  0x79   :  { %1287 = vmatmul.msk.f32.gmra.mxu0 %vm67_vm0, %v26_v39 }
  0x7a   :  { %1319 = vmatmul.msk.f32.gmra.mxu1 %vm67_vm0, %v26_v39 }
  0x81   :  { %1288 = vmatmul.msk.f32.gmra.mxu0 %vm67_vm0, %v27_v40 }
  0x82   :  { %1320 = vmatmul.msk.f32.gmra.mxu1 %vm67_vm0, %v27_v40 }
  0x89   :  { %1289 = vmatmul.msk.f32.gmra.mxu0 %vm67_vm0, %v28_v41 }
  0x8a   :  { %1321 = vmatmul.msk.f32.gmra.mxu1 %vm67_vm0, %v28_v41 }
  0x91   :  { %1290 = vmatmul.msk.f32.gmra.mxu0 %vm67_vm0, %v29_v42 }
  0x92   :  { %1322 = vmatmul.msk.f32.gmra.mxu1 %vm67_vm0, %v29_v42 }
  0x99   :  { %1291 = vmatmul.msk.f32.gmra.mxu0 %vm67_vm0, %v30_v46 }
  0x9a   :  { %1323 = vmatmul.msk.f32.gmra.mxu1 %vm67_vm0, %v30_v46 }
  0xa1   :  { %1292 = vmatmul.msk.f32.gmra.mxu0 %vm67_vm0, %v31_v52 }
  0xa2   :  { %1324 = vmatmul.msk.f32.gmra.mxu1 %vm67_vm0, %v31_v52 }
  0xa9   :  { %1293 = vmatmul.msk.f32.gmra.mxu0 %vm67_vm0, %v32_v58 }
  0xaa   :  { %1325 = vmatmul.msk.f32.gmra.mxu1 %vm67_vm0, %v32_v58 }
  0xb1   :  { %1294 = vmatmul.msk.f32.gmra.mxu0 %vm67_vm0, %v33_v0 }
  0xb2   :  { %1326 = vmatmul.msk.f32.gmra.mxu1 %vm67_vm0, %v33_v0 }
  0xb9   :  { %1295 = vmatmul.msk.f32.gmra.mxu0 %vm67_vm0, %v34_v6 }
  0xba   :  { %1327 = vmatmul.msk.f32.gmra.mxu1 %vm67_vm0, %v34_v6 }
  0xbe   :  { %v229_v47 = vpop.f32.mrf.mxu0 }
  0xbf   :  { %v294_v48 = vpop.f32.mrf.mxu1  ;;  %v1680_v49 = vsub.f32 %v1670_v44, %v229_v47 }
  0xc0   :  { %v1683_v50 = vsub.f32 %v1672_v45, %v294_v48 }
  0xc2   :  { %v383_v51 = vmin.f32 %v1680_v49, %v1683_v50 }
  0xc4   :  { %384 = vmin.xlane.f32.xlu0 %v383_v51 }
  0xc6   :  { %v232_v53 = vpop.f32.mrf.mxu0 }
  0xc7   :  { %v297_v54 = vpop.f32.mrf.mxu1  ;;  %v1693_v55 = vsub.f32 %v1670_v44, %v232_v53 }
  0xc8   :  { %v1696_v56 = vsub.f32 %v1672_v45, %v297_v54 }
  0xca   :  { %v386_v57 = vmin.f32 %v1693_v55, %v1696_v56 }
  0xcc   :  { %387 = vmin.xlane.f32.xlu0 %v386_v57 }
  0xce   :  { %v235_v59 = vpop.f32.mrf.mxu0 }
  0xcf   :  { %v300_v60 = vpop.f32.mrf.mxu1  ;;  %v1706_v61 = vsub.f32 %v1670_v44, %v235_v59 }
  0xd0   :  { %v1709_v62 = vsub.f32 %v1672_v45, %v300_v60 }
  0xd2   :  { %v389_v63 = vmin.f32 %v1706_v61, %v1709_v62 }
  0xd4   :  { %390 = vmin.xlane.f32.xlu1 %v389_v63 }
  0xd6   :  { %v238_v1 = vpop.f32.mrf.mxu0 }
  0xd7   :  { %v303_v2 = vpop.f32.mrf.mxu1  ;;  %v1719_v3 = vsub.f32 %v1670_v44, %v238_v1 }
  0xd8   :  { %v1722_v4 = vsub.f32 %v1672_v45, %v303_v2 }
  0xda   :  { %v392_v5 = vmin.f32 %v1719_v3, %v1722_v4 }
  0xdc   :  { %393 = vmin.xlane.f32.xlu1 %v392_v5 }
  0xde   :  { %v241_v7 = vpop.f32.mrf.mxu0 }
  0xdf   :  { %v306_v8 = vpop.f32.mrf.mxu1  ;;  %v1732_v9 = vsub.f32 %v1670_v44, %v241_v7 }
  0xe0   :  { %v1735_v10 = vsub.f32 %v1672_v45, %v306_v8 }
  0xe2   :  { %v395_v11 = vmin.f32 %v1732_v9, %v1735_v10 }
  0xe4   :  { %396 = vmin.xlane.f32.xlu2 %v395_v11 }
  0xe6   :  { %v244_v12 = vpop.f32.mrf.mxu0 }
  0xe7   :  { %v309_v13 = vpop.f32.mrf.mxu1  ;;  %v1740_v14 = vsub.f32 %v1670_v44, %v244_v12 }
  0xe8   :  { %v1743_v15 = vsub.f32 %v1672_v45, %v309_v13 }
  0xea   :  { %v398_v16 = vmin.f32 %v1740_v14, %v1743_v15 }
  0xec   :  { %399 = vmin.xlane.f32.xlu2 %v398_v16 }
  0xee   :  { %v247_v17 = vpop.f32.mrf.mxu0 }
  0xef   :  { %v312_v18 = vpop.f32.mrf.mxu1  ;;  %v1748_v19 = vsub.f32 %v1670_v44, %v247_v17 }
  0xf0   :  { %v1751_v20 = vsub.f32 %v1672_v45, %v312_v18 }
  0xf2   :  { %v401_v21 = vmin.f32 %v1748_v19, %v1751_v20 }
  0xf4   :  { %402 = vmin.xlane.f32.xlu0 %v401_v21 }
  0xf6   :  { %v250_v22 = vpop.f32.mrf.mxu0 }
  0xf7   :  { %v315_v23 = vpop.f32.mrf.mxu1  ;;  %v1756_v24 = vsub.f32 %v1670_v44, %v250_v22 }
  0xf8   :  { %v1759_v25 = vsub.f32 %v1672_v45, %v315_v23 }
  0xfa   :  { %v404_v26 = vmin.f32 %v1756_v24, %v1759_v25 }
  0xfc   :  { %405 = vmin.xlane.f32.xlu2 %v404_v26 }
  0xfe   :  { %v253_v28 = vpop.f32.mrf.mxu0 }
  0xff   :  { %v318_v29 = vpop.f32.mrf.mxu1  ;;  %v1781_v41 = vsub.f32 %v1670_v44, %v253_v28 }
 0x100   :  { %v1784_v42 = vsub.f32 %v1672_v45, %v318_v29 }
 0x102   :  { %v407_v51 = vmin.f32 %v1781_v41, %v1784_v42 }
 0x106   :  { %v256_v33 = vpop.f32.mrf.mxu0 }
 0x107   :  { %v321_v36 = vpop.f32.mrf.mxu1  ;;  %v1796_v54 = vsub.f32 %v1670_v44, %v256_v33 }
 0x10e   :  { %v259_v47 = vpop.f32.mrf.mxu0 }
 0x10f   :  { %v1814_v1 = vsub.f32 %v1670_v44, %v259_v47 }
 0x137   :  { %v385_v32 = vpop.xlane.xlu0 %384 }
 0x138   :  { %vm431_vm1 = vcmp.le.f32.partialorder %v1680_v49, %v385_v32  ;;  %vm432_vm2 = vcmp.le.f32.partialorder %v1683_v50, %v385_v32  ;;  %v324_v49 = vpop.f32.mrf.mxu1 }
 0x139   :  { %v463_v34 = vsel %vm431_vm1, %v1763_v30, 256  ;;  %v464_v35 = vsel %vm432_vm2, %v1766_v31, 256  ;;  %v1820_v2 = vsub.f32 %v1672_v45, %v324_v49 }
 0x13a   :  { %vm495_vm3 = vcmp.lt.s32.totalorder %v463_v34, %v464_v35 }
 0x13b   :  { %v1772_v37 = vsel %vm495_vm3, %v463_v34, %v464_v35 }
 0x13c   :  { %v498_v38 = vshra.s32 %v1772_v37, 16 }
 0x13e   :  { %v1775_v39 = vcvt.s32.f32 %v498_v38 }
 0x13f   :  { %v388_v40 = vpop.xlane.xlu0 %387 }
 0x140   :  { %vm433_vm4 = vcmp.le.f32.partialorder %v1693_v55, %v388_v40  ;;  %vm434_vm5 = vcmp.le.f32.partialorder %v1696_v56, %v388_v40  ;;  %501 = vmin.xlane.f32.xlu1 %v1775_v39  ;;  %v1802_v55 = vsub.f32 %v1672_v45, %v321_v36 }
 0x141   :  { %v465_v43 = vsel %vm433_vm4, %v1763_v30, 256  ;;  %v466_v46 = vsel %vm434_vm5, %v1766_v31, 256 }
 0x142   :  { %vm511_vm6 = vcmp.lt.s32.totalorder %v465_v43, %v466_v46  ;;  %v410_v60 = vmin.f32 %v1796_v54, %v1802_v55 }
 0x143   :  { %v1788_v48 = vsel %vm511_vm6, %v465_v43, %v466_v46 }
 0x144   :  { %v514_v50 = vshra.s32 %v1788_v48, 16 }
 0x146   :  { %v1793_v52 = vcvt.s32.f32 %v514_v50 }
 0x147   :  { %v391_v53 = vpop.xlane.xlu1 %390 }
 0x148   :  { %vm435_vm7 = vcmp.le.f32.partialorder %v1706_v61, %v391_v53  ;;  %vm436_vm8 = vcmp.le.f32.partialorder %v1709_v62, %v391_v53  ;;  %517 = vmin.xlane.f32.xlu0 %v1793_v52  ;;  %408 = vmin.xlane.f32.xlu1 %v407_v51  ;;  %v262_v61 = vpop.f32.mrf.mxu0  ;;  %v327_v62 = vpop.f32.mrf.mxu1 }
 0x149   :  { %v467_v56 = vsel %vm435_vm7, %v1763_v30, 256  ;;  %v468_v57 = vsel %vm436_vm8, %v1766_v31, 256  ;;  %v1832_v13 = vsub.f32 %v1670_v44, %v262_v61  ;;  %v1838_v17 = vsub.f32 %v1672_v45, %v327_v62 }
 0x14a   :  { %vm527_vm9 = vcmp.lt.s32.totalorder %v467_v56, %v468_v57 }
 0x14b   :  { %v1806_v58 = vsel %vm527_vm9, %v467_v56, %v468_v57 }
 0x14c   :  { %v530_v59 = vshra.s32 %v1806_v58, 16 }
 0x14e   :  { %v1811_v63 = vcvt.s32.f32 %v530_v59 }
 0x14f   :  { %v394_v0 = vpop.xlane.xlu1 %393 }
 0x150   :  { %vm437_vm10 = vcmp.le.f32.partialorder %v1719_v3, %v394_v0  ;;  %vm438_vm11 = vcmp.le.f32.partialorder %v1722_v4, %v394_v0  ;;  %533 = vmin.xlane.f32.xlu2 %v1811_v63  ;;  %411 = vmin.xlane.f32.xlu0 %v410_v60  ;;  %v413_v3 = vmin.f32 %v1814_v1, %v1820_v2  ;;  %v265_v4 = vpop.f32.mrf.mxu0  ;;  %v330_v16 = vpop.f32.mrf.mxu1 }
 0x151   :  { %v469_v5 = vsel %vm437_vm10, %v1763_v30, 256  ;;  %v470_v6 = vsel %vm438_vm11, %v1766_v31, 256  ;;  %v1850_v27 = vsub.f32 %v1670_v44, %v265_v4  ;;  %v1856_v28 = vsub.f32 %v1672_v45, %v330_v16 }
 0x152   :  { %vm543_vm12 = vcmp.lt.s32.totalorder %v469_v5, %v470_v6 }
 0x153   :  { %v1824_v7 = vsel %vm543_vm12, %v469_v5, %v470_v6 }
 0x154   :  { %v546_v8 = vshra.s32 %v1824_v7, 16 }
 0x156   :  { %v1829_v11 = vcvt.s32.f32 %v546_v8 }
 0x157   :  { %v397_v12 = vpop.xlane.xlu2 %396 }
 0x158   :  { %vm439_vm13 = vcmp.le.f32.partialorder %v1732_v9, %v397_v12  ;;  %vm440_vm14 = vcmp.le.f32.partialorder %v1735_v10, %v397_v12  ;;  %549 = vmin.xlane.f32.xlu1 %v1829_v11  ;;  %414 = vmin.xlane.f32.xlu2 %v413_v3  ;;  %v416_v9 = vmin.f32 %v1832_v13, %v1838_v17  ;;  %v268_v33 = vpop.f32.mrf.mxu0  ;;  %v333_v34 = vpop.f32.mrf.mxu1  ;;  %v497_v12 = vand.u32 65535, %v1772_v37 }
 0x159   :  { %v471_v18 = vsel %vm439_vm13, %v1763_v30, 256  ;;  %v472_v21 = vsel %vm440_vm14, %v1766_v31, 256  ;;  %v1868_v40 = vsub.f32 %v1670_v44, %v268_v33  ;;  %v1874_v43 = vsub.f32 %v1672_v45, %v333_v34 }
 0x15a   :  { %vm559_vm15 = vcmp.lt.s32.totalorder %v471_v18, %v472_v21 }
 0x15b   :  { %v1842_v22 = vsel %vm559_vm15, %v471_v18, %v472_v21  ;;  %v499_v18 = vcvt.s32.f32 %v497_v12 }
 0x15c   :  { %v562_v23 = vshra.s32 %v1842_v22, 16 }
 0x15e   :  { %v1847_v26 = vcvt.s32.f32 %v562_v23 }
 0x15f   :  { %v400_v10 = vpop.xlane.xlu2 %399 }
 0x160   :  { %vm441_vm1 = vcmp.le.f32.partialorder %v1740_v14, %v400_v10  ;;  %vm442_vm2 = vcmp.le.f32.partialorder %v1743_v15, %v400_v10  ;;  %565 = vmin.xlane.f32.xlu0 %v1847_v26  ;;  %417 = vmin.xlane.f32.xlu1 %v416_v9  ;;  %v419_v14 = vmin.f32 %v1850_v27, %v1856_v28  ;;  %v271_v50 = vpop.f32.mrf.mxu0  ;;  %v336_v51 = vpop.f32.mrf.mxu1 }
 0x161   :  { %v473_v29 = vsel %vm441_vm1, %v1763_v30, 256  ;;  %v474_v32 = vsel %vm442_vm2, %v1766_v31, 256  ;;  %v1886_v57 = vsub.f32 %v1670_v44, %v271_v50  ;;  %v1892_v59 = vsub.f32 %v1672_v45, %v336_v51 }
 0x162   :  { %vm575_vm3 = vcmp.lt.s32.totalorder %v473_v29, %v474_v32 }
 0x163   :  { %v1860_v35 = vsel %vm575_vm3, %v473_v29, %v474_v32 }
 0x164   :  { %v578_v36 = vshra.s32 %v1860_v35, 16 }
 0x166   :  { %v1865_v15 = vcvt.s32.f32 %v578_v36 }
 0x167   :  { %v403_v38 = vpop.xlane.xlu0 %402 }
 0x168   :  { %vm443_vm4 = vcmp.le.f32.partialorder %v1748_v19, %v403_v38  ;;  %vm444_vm5 = vcmp.le.f32.partialorder %v1751_v20, %v403_v38  ;;  %581 = vmin.xlane.f32.xlu2 %v1865_v15  ;;  %420 = vmin.xlane.f32.xlu1 %v419_v14  ;;  %v422_v19 = vmin.f32 %v1868_v40, %v1874_v43  ;;  %v274_v5 = vpop.f32.mrf.mxu0  ;;  %v545_v38 = vand.u32 65535, %v1824_v7 }
 0x169   :  { %v475_v46 = vsel %vm443_vm4, %v1763_v30, 256  ;;  %v476_v47 = vsel %vm444_vm5, %v1766_v31, 256  ;;  %v1905_v8 = vsub.f32 %v1670_v44, %v274_v5  ;;  %v513_v44 = vand.u32 65535, %v1788_v48 }
 0x16a   :  { %vm591_vm6 = vcmp.lt.s32.totalorder %v475_v46, %v476_v47  ;;  %v529_v48 = vand.u32 65535, %v1806_v58  ;;  %v547_v50 = vcvt.s32.f32 %v545_v38 }
 0x16b   :  { %v1878_v49 = vsel %vm591_vm6, %v475_v46, %v476_v47  ;;  %v515_v9 = vcvt.s32.f32 %v513_v44 }
 0x16c   :  { %v594_v53 = vshra.s32 %v1878_v49, 16  ;;  %v531_v34 = vcvt.s32.f32 %v529_v48 }
 0x16e   :  { %v1883_v20 = vcvt.s32.f32 %v594_v53 }
 0x16f   :  { %v406_v56 = vpop.xlane.xlu2 %405 }
 0x170   :  { %vm445_vm7 = vcmp.le.f32.partialorder %v1756_v24, %v406_v56  ;;  %vm446_vm8 = vcmp.le.f32.partialorder %v1759_v25, %v406_v56  ;;  %597 = vmin.xlane.f32.xlu2 %v1883_v20  ;;  %423 = vmin.xlane.f32.xlu1 %v422_v19  ;;  %v425_v24 = vmin.f32 %v1886_v57, %v1892_v59  ;;  %v339_v25 = vpop.f32.mrf.mxu1  ;;  %v561_v19 = vand.u32 65535, %v1842_v22 }
 0x171   :  { %v477_v60 = vsel %vm445_vm7, %v1763_v30, 256  ;;  %v478_v61 = vsel %vm446_vm8, %v1766_v31, 256  ;;  %v1908_v3 = vsub.f32 %v1672_v45, %v339_v25 }
 0x172   :  { %vm607_vm9 = vcmp.lt.s32.totalorder %v477_v60, %v478_v61 }
 0x173   :  { %v1896_v62 = vsel %vm607_vm9, %v477_v60, %v478_v61  ;;  %v428_v4 = vmin.f32 %v1905_v8, %v1908_v3  ;;  %v563_v61 = vcvt.s32.f32 %v561_v19 }
 0x174   :  { %v610_v0 = vshra.s32 %v1896_v62, 16 }
 0x176   :  { %v1901_v6 = vcvt.s32.f32 %v610_v0 }
 0x178   :  { %613 = vmin.xlane.f32.xlu2 %v1901_v6  ;;  %426 = vmin.xlane.f32.xlu1 %v425_v24  ;;  %v577_v24 = vand.u32 65535, %v1860_v35 }
 0x180   :  { %429 = vmin.xlane.f32.xlu1 %v428_v4  ;;  %v579_v4 = vcvt.s32.f32 %v577_v24 }
 0x1b3   :  { %v1913_v16 = vpop.xlane.xlu1 %501 }
 0x1b4   :  { %vm503_vm10 = vcmp.eq.f32.partialorder %v1775_v39, %v1913_v16 }
 0x1b5   :  { %v504_v21 = vsel %vm503_vm10, %v499_v18, inf }
 0x1b6   :  { %505 = vmin.xlane.f32.xlu0 %v504_v21 }
 0x1bb   :  { %v1918_v23 = vpop.xlane.xlu0 %517  ;;  %v409_v45 = vpop.xlane.xlu1 %408 }
 0x1bc   :  { %vm447_vm11 = vcmp.le.f32.partialorder %v1781_v41, %v409_v45  ;;  %vm448_vm12 = vcmp.le.f32.partialorder %v1784_v42, %v409_v45  ;;  %vm519_vm13 = vcmp.eq.f32.partialorder %v1793_v52, %v1918_v23 }
 0x1bd   :  { %v479_v37 = vsel %vm447_vm11, %v1763_v30, 256  ;;  %v480_v10 = vsel %vm448_vm12, %v1766_v31, 256  ;;  %v520_v39 = vsel %vm519_vm13, %v515_v9, inf }
 0x1be   :  { %vm623_vm14 = vcmp.lt.s32.totalorder %v479_v37, %v480_v10  ;;  %521 = vmin.xlane.f32.xlu0 %v520_v39  ;;  %v609_v39 = vand.u32 65535, %v1896_v62 }
 0x1bf   :  { %v1926_v29 = vsel %vm623_vm14, %v479_v37, %v480_v10 }
 0x1c0   :  { %v626_v32 = vshra.s32 %v1926_v29, 16 }
 0x1c2   :  { %v1930_v33 = vcvt.s32.f32 %v626_v32 }
 0x1c3   :  { %v1932_v41 = vpop.xlane.xlu2 %533  ;;  %v412_v42 = vpop.xlane.xlu0 %411 }
 0x1c4   :  { %vm449_vm15 = vcmp.le.f32.partialorder %v1796_v54, %v412_v42  ;;  %vm450_vm1 = vcmp.le.f32.partialorder %v1802_v55, %v412_v42  ;;  %629 = vmin.xlane.f32.xlu2 %v1930_v33  ;;  %vm535_vm2 = vcmp.eq.f32.partialorder %v1811_v63, %v1932_v41  ;;  %v611_v42 = vcvt.s32.f32 %v609_v39 }
 0x1c5   :  { %v481_v52 = vsel %vm449_vm15, %v1763_v30, 256  ;;  %v482_v58 = vsel %vm450_vm1, %v1766_v31, 256  ;;  %v536_v36 = vsel %vm535_vm2, %v531_v34, inf }
 0x1c6   :  { %vm639_vm3 = vcmp.lt.s32.totalorder %v481_v52, %v482_v58  ;;  %537 = vmin.xlane.f32.xlu0 %v536_v36 }
 0x1c7   :  { %v1941_v14 = vsel %vm639_vm3, %v481_v52, %v482_v58 }
 0x1c8   :  { %v642_v54 = vshra.s32 %v1941_v14, 16 }
 0x1ca   :  { %v1945_v46 = vcvt.s32.f32 %v642_v54 }
 0x1cb   :  { %v1947_v55 = vpop.xlane.xlu1 %549  ;;  %v415_v47 = vpop.xlane.xlu2 %414 }
 0x1cc   :  { %vm451_vm4 = vcmp.le.f32.partialorder %v1814_v1, %v415_v47  ;;  %vm452_vm5 = vcmp.le.f32.partialorder %v1820_v2, %v415_v47  ;;  %645 = vmin.xlane.f32.xlu2 %v1945_v46  ;;  %vm551_vm6 = vcmp.eq.f32.partialorder %v1829_v11, %v1947_v55 }
 0x1cd   :  { %v483_v63 = vsel %vm451_vm4, %v1763_v30, 256  ;;  %v484_v7 = vsel %vm452_vm5, %v1766_v31, 256  ;;  %v552_v51 = vsel %vm551_vm6, %v547_v50, inf }
 0x1ce   :  { %vm655_vm7 = vcmp.lt.s32.totalorder %v483_v63, %v484_v7  ;;  %553 = vmin.xlane.f32.xlu0 %v552_v51 }
 0x1cf   :  { %v1956_v53 = vsel %vm655_vm7, %v483_v63, %v484_v7  ;;  %v524_v63 = vcvt.f32.s32 %v1918_v23  ;;  %v1451_v7 = vmov 1.0   ;;  %v752_v23 = vadd.s32 4294967288, %v1763_v30 }
 0x1d0   :  { %v658_v1 = vshra.s32 %v1956_v53, 16 }
 0x1d2   :  { %v1960_v56 = vcvt.s32.f32 %v658_v1 }
 0x1d3   :  { %v1962_v2 = vpop.xlane.xlu0 %565  ;;  %v418_v60 = vpop.xlane.xlu1 %417 }
 0x1d4   :  { %vm453_vm8 = vcmp.le.f32.partialorder %v1832_v13, %v418_v60  ;;  %vm454_vm9 = vcmp.le.f32.partialorder %v1838_v17, %v418_v60  ;;  %661 = vmin.xlane.f32.xlu1 %v1960_v56  ;;  %vm567_vm10 = vcmp.eq.f32.partialorder %v1847_v26, %v1962_v2 }
 0x1d5   :  { %v485_v11 = vsel %vm453_vm8, %v1763_v30, 256  ;;  %v486_v22 = vsel %vm454_vm9, %v1766_v31, 256  ;;  %v568_v0 = vsel %vm567_vm10, %v563_v61, inf  ;;  %v625_v61 = vand.u32 65535, %v1926_v29 }
 0x1d6   :  { %vm671_vm11 = vcmp.lt.s32.totalorder %v485_v11, %v486_v22  ;;  %569 = vmin.xlane.f32.xlu0 %v568_v0 }
 0x1d7   :  { %v1972_v5 = vsel %vm671_vm11, %v485_v11, %v486_v22  ;;  %v627_v24 = vcvt.s32.f32 %v625_v61 }
 0x1d8   :  { %v674_v13 = vshra.s32 %v1972_v5, 16 }
 0x1da   :  { %v1981_v26 = vcvt.s32.f32 %v674_v13 }
 0x1db   :  { %v1975_v25 = vpop.xlane.xlu2 %581  ;;  %v421_v17 = vpop.xlane.xlu1 %420 }
 0x1dc   :  { %vm455_vm12 = vcmp.le.f32.partialorder %v1850_v27, %v421_v17  ;;  %vm456_vm13 = vcmp.le.f32.partialorder %v1856_v28, %v421_v17  ;;  %vm583_vm14 = vcmp.eq.f32.partialorder %v1865_v15, %v1975_v25  ;;  %v593_v27 = vand.u32 65535, %v1878_v49 }
 0x1dd   :  { %v487_v12 = vsel %vm455_vm12, %v1763_v30, 256  ;;  %v488_v35 = vsel %vm456_vm13, %v1766_v31, 256  ;;  %v584_v18 = vsel %vm583_vm14, %v579_v4, inf  ;;  %vm754_vm14 = vcmask 130112  }
 0x1de   :  { %vm687_vm15 = vcmp.lt.s32.totalorder %v487_v12, %v488_v35  ;;  %585 = vmin.xlane.f32.xlu2 %v584_v18  ;;  %677 = vmin.xlane.f32.xlu0 %v1981_v26  ;;  %v595_v45 = vcvt.s32.f32 %v593_v27  ;;  %v641_v18 = vand.u32 65535, %v1941_v14 }
 0x1df   :  { %v1986_v21 = vsel %vm687_vm15, %v487_v12, %v488_v35  ;;  %v756_v12 = vadd.s32 4294967280, %v1763_v30 }
 0x1e0   :  { %v690_v28 = vshra.s32 %v1986_v21, 16 }
 0x1e2   :  { %v1994_v9 = vcvt.s32.f32 %v690_v28 }
 0x1e3   :  { %v1990_v44 = vpop.xlane.xlu2 %597  ;;  %v424_v15 = vpop.xlane.xlu1 %423 }
 0x1e4   :  { %vm457_vm1 = vcmp.le.f32.partialorder %v1868_v40, %v424_v15  ;;  %vm458_vm2 = vcmp.le.f32.partialorder %v1874_v43, %v424_v15  ;;  %vm599_vm3 = vcmp.eq.f32.partialorder %v1883_v20, %v1990_v44  ;;  %v556_v15 = vcvt.f32.s32 %v1947_v55 }
 0x1e5   :  { %v489_v37 = vsel %vm457_vm1, %v1763_v30, 256  ;;  %v490_v10 = vsel %vm458_vm2, %v1766_v31, 256  ;;  %v600_v49 = vsel %vm599_vm3, %v595_v45, inf  ;;  %vm758_vm3 = vcmask 195712  }
 0x1e6   :  { %vm703_vm4 = vcmp.lt.s32.totalorder %v489_v37, %v490_v10  ;;  %693 = vmin.xlane.f32.xlu2 %v1994_v9  ;;  %601 = vmin.xlane.f32.xlu1 %v600_v49  ;;  %v557_v39 = vshll.u32 %v556_v15, 16 }
 0x1e7   :  { %v2002_v48 = vsel %vm703_vm4, %v489_v37, %v490_v10  ;;  %v643_v37 = vcvt.s32.f32 %v641_v18 }
 0x1e8   :  { %v706_v40 = vshra.s32 %v2002_v48, 16 }
 0x1ea   :  { %v2011_v20 = vcvt.s32.f32 %v706_v40  ;;  %v760_v40 = vadd.s32 4294967272, %v1763_v30 }
 0x1eb   :  { %v2005_v43 = vpop.xlane.xlu2 %613  ;;  %v427_v32 = vpop.xlane.xlu1 %426 }
 0x1ec   :  { %vm459_vm5 = vcmp.le.f32.partialorder %v1886_v57, %v427_v32  ;;  %vm460_vm6 = vcmp.le.f32.partialorder %v1892_v59, %v427_v32  ;;  %vm615_vm7 = vcmp.eq.f32.partialorder %v1901_v6, %v2005_v43  ;;  %v508_v59 = vcvt.f32.s32 %v1913_v16 }
 0x1ed   :  { %v491_v34 = vsel %vm459_vm5, %v1763_v30, 256  ;;  %v492_v62 = vsel %vm460_vm6, %v1766_v31, 256  ;;  %v616_v52 = vsel %vm615_vm7, %v611_v42, inf  ;;  %v525_v16 = vshll.u32 %v524_v63, 16 }
 0x1ee   :  { %vm719_vm8 = vcmp.lt.s32.totalorder %v491_v34, %v492_v62  ;;  %617 = vmin.xlane.f32.xlu0 %v616_v52  ;;  %709 = vmin.xlane.f32.xlu1 %v2011_v20  ;;  %v509_v38 = vshll.u32 %v508_v59, 16  ;;  %v657_v42 = vand.u32 65535, %v1956_v53  ;;  %vm762_vm7 = vcmask 261312  }
 0x1ef   :  { %v2016_v58 = vsel %vm719_vm8, %v491_v34, %v492_v62  ;;  %v572_v62 = vcvt.f32.s32 %v1962_v2  ;;  %v764_v2 = vadd.s32 4294967264, %v1763_v30  ;;  %v588_v63 = vcvt.f32.s32 %v1975_v25 }
 0x1f0   :  { %v722_v57 = vshra.s32 %v2016_v58, 16 }
 0x1f2   :  { %v2019_v36 = vcvt.s32.f32 %v722_v57  ;;  %v659_v57 = vcvt.s32.f32 %v657_v42 }
 0x1f3   :  { %v430_v47 = vpop.xlane.xlu1 %429 }
 0x1f4   :  { %vm461_vm11 = vcmp.le.f32.partialorder %v1905_v8, %v430_v47  ;;  %vm462_vm12 = vcmp.le.f32.partialorder %v1908_v3, %v430_v47  ;;  %v540_v8 = vcvt.f32.s32 %v1932_v41 }
 0x1f5   :  { %v493_v19 = vsel %vm461_vm11, %v1763_v30, 256  ;;  %v494_v1 = vsel %vm462_vm12, %v1766_v31, 256  ;;  %vm766_vm11 = vcmask 326912  }
 0x1f6   :  { %725 = vmin.xlane.f32.xlu0 %v2019_v36  ;;  %vm735_vm13 = vcmp.lt.s32.totalorder %v493_v19, %v494_v1  ;;  %v541_v4 = vshll.u32 %v540_v8, 16  ;;  %v604_v8 = vcvt.f32.s32 %v1990_v44 }
 0x1f7   :  { %v2044_v17 = vsel %vm735_vm13, %v493_v19, %v494_v1 }
 0x1f8   :  { %v738_v28 = vshra.s32 %v2044_v17, 16 }
 0x1fa   :  { %v2058_v14 = vcvt.s32.f32 %v738_v28 }
 0x229   :  { %v506_v6 = vpop.xlane.xlu0 %505 }
 0x22a   :  { %v507_v54 = vcvt.f32.s32 %v506_v6 }
 0x22c   :  { %v510_v50 = vadd.s32 %v509_v38, %v507_v54  ;;  %v573_v38 = vshll.u32 %v572_v62, 16  ;;  %v780_v62 = vadd.s32 4294967232, %v1763_v30 }
 0x22e   :  { %vm813_vm9 = vcmp.eq.s32.totalorder %v1763_v30, %v510_v50  ;;  %vm814_vm10 = vcmp.eq.s32.totalorder %v1766_v31, %v510_v50  ;;  %v751_v3 = vperm.slane %v510_v50, %v1763_v30  ;;  %v673_v50 = vand.u32 65535, %v1972_v5 }
 0x22f   :  { %1360 = vmatmul.msk.f32.vlgmr.msra.gmra.mxu2 %vm813_vm9, %v1451_v7  ;;  %1376 = vmatmul.msk.f32.vlgmr.msra.gmra.mxu3 %vm814_vm10, %v1451_v7 }
 0x230   :  { %v675_v1 = vcvt.s32.f32 %v673_v50  ;;  %v784_v50 = vadd.s32 4294967224, %v1763_v30 }
 0x231   :  { %v522_v51 = vpop.xlane.xlu0 %521 }
 0x232   :  { %v523_v60 = vcvt.f32.s32 %v522_v51 }
 0x234   :  { %v526_v11 = vadd.s32 %v525_v16, %v523_v60  ;;  %v768_v60 = vadd.s32 4294967256, %v1763_v30 }
 0x236   :  { %v753_v22 = vperm.slane %v526_v11, %v752_v23  ;;  %vm815_vm15 = vcmp.eq.s32.totalorder %v1763_v30, %v526_v11  ;;  %vm816_vm1 = vcmp.eq.s32.totalorder %v1766_v31, %v526_v11  ;;  %v589_v23 = vshll.u32 %v588_v63, 16 }
 0x237   :  { %1361 = vmatmul.msk.f32.gmra.mxu2 %vm815_vm15, %v1451_v7  ;;  %1377 = vmatmul.msk.f32.gmra.mxu3 %vm816_vm1, %v1451_v7  ;;  %v2040_v0 = vpop.xlane.xlu2 %629  ;;  %vm770_vm15 = vcmask 392512   ;;  %v689_v11 = vand.u32 65535, %v1986_v21 }
 0x238   :  { %v755_v29 = vsel %vm754_vm14, %v753_v22, %v751_v3  ;;  %vm631_vm2 = vcmp.eq.f32.partialorder %v1930_v33, %v2040_v0 }
 0x239   :  { %v538_v41 = vpop.xlane.xlu0 %537  ;;  %v632_v13 = vsel %vm631_vm2, %v627_v24, inf }
 0x23a   :  { %v539_v35 = vcvt.f32.s32 %v538_v41  ;;  %633 = vmin.xlane.f32.xlu2 %v632_v13  ;;  %v605_v41 = vshll.u32 %v604_v8, 16  ;;  %v772_v13 = vadd.s32 4294967248, %v1763_v30 }
 0x23c   :  { %v542_v27 = vadd.s32 %v541_v4, %v539_v35  ;;  %v620_v35 = vcvt.f32.s32 %v2005_v43 }
 0x23e   :  { %v757_v45 = vperm.slane %v542_v27, %v756_v12  ;;  %vm817_vm4 = vcmp.eq.s32.totalorder %v1763_v30, %v542_v27  ;;  %vm818_vm5 = vcmp.eq.s32.totalorder %v1766_v31, %v542_v27  ;;  %v705_v12 = vand.u32 65535, %v2002_v48 }
 0x23f   :  { %1362 = vmatmul.msk.f32.gmra.mxu2 %vm817_vm4, %v1451_v7  ;;  %1378 = vmatmul.msk.f32.gmra.mxu3 %vm818_vm5, %v1451_v7  ;;  %v2054_v33 = vpop.xlane.xlu2 %645  ;;  %vm774_vm4 = vcmask 458112  }
 0x240   :  { %v759_v10 = vsel %vm758_vm3, %v757_v45, %v755_v29  ;;  %vm647_vm6 = vcmp.eq.f32.partialorder %v1945_v46, %v2054_v33  ;;  %v691_v29 = vcvt.s32.f32 %v689_v11  ;;  %v707_v15 = vcvt.s32.f32 %v705_v12 }
 0x241   :  { %v554_v49 = vpop.xlane.xlu0 %553  ;;  %v648_v55 = vsel %vm647_vm6, %v643_v37, inf  ;;  %v621_v45 = vshll.u32 %v620_v35, 16  ;;  %v776_v37 = vadd.s32 4294967240, %v1763_v30 }
 0x242   :  { %v555_v32 = vcvt.f32.s32 %v554_v49  ;;  %649 = vmin.xlane.f32.xlu1 %v648_v55  ;;  %741 = vmin.xlane.f32.xlu2 %v2058_v14  ;;  %v721_v49 = vand.u32 65535, %v2016_v58  ;;  %v636_v58 = vcvt.f32.s32 %v2040_v0 }
 0x244   :  { %v558_v34 = vadd.s32 %v557_v39, %v555_v32  ;;  %v723_v32 = vcvt.s32.f32 %v721_v49 }
 0x246   :  { %v761_v52 = vperm.slane %v558_v34, %v760_v40  ;;  %vm819_vm8 = vcmp.eq.s32.totalorder %v1763_v30, %v558_v34  ;;  %vm820_vm9 = vcmp.eq.s32.totalorder %v1766_v31, %v558_v34  ;;  %v637_v34 = vshll.u32 %v636_v58, 16 }
 0x247   :  { %1363 = vmatmul.msk.f32.gmra.mxu2 %vm819_vm8, %v1451_v7  ;;  %1379 = vmatmul.msk.f32.gmra.mxu3 %vm820_vm9, %v1451_v7  ;;  %v2068_v46 = vpop.xlane.xlu1 %661  ;;  %vm778_vm8 = vcmask 523712  }
 0x248   :  { %v763_v59 = vsel %vm762_vm7, %v761_v52, %v759_v10  ;;  %vm663_vm10 = vcmp.eq.f32.partialorder %v1960_v56, %v2068_v46 }
 0x249   :  { %v570_v53 = vpop.xlane.xlu0 %569  ;;  %v664_v6 = vsel %vm663_vm10, %v659_v57, inf }
 0x24a   :  { %v571_v54 = vcvt.f32.s32 %v570_v53  ;;  %665 = vmin.xlane.f32.xlu0 %v664_v6  ;;  %v652_v53 = vcvt.f32.s32 %v2054_v33 }
 0x24c   :  { %v574_v47 = vadd.s32 %v573_v38, %v571_v54 }
 0x24e   :  { %v765_v16 = vperm.slane %v574_v47, %v764_v2  ;;  %vm821_vm12 = vcmp.eq.s32.totalorder %v1763_v30, %v574_v47  ;;  %vm822_vm13 = vcmp.eq.s32.totalorder %v1766_v31, %v574_v47  ;;  %v653_v47 = vshll.u32 %v652_v53, 16 }
 0x24f   :  { %1364 = vmatmul.msk.f32.gmra.mxu2 %vm821_vm12, %v1451_v7  ;;  %1380 = vmatmul.msk.f32.gmra.mxu3 %vm822_vm13, %v1451_v7  ;;  %vm782_vm12 = vcmask 589312  }
 0x250   :  { %v767_v56 = vsel %vm766_vm11, %v765_v16, %v763_v59  ;;  %v737_v59 = vand.u32 65535, %v2044_v17 }
 0x251   :  { %v586_v51 = vpop.xlane.xlu2 %585  ;;  %v2079_v19 = vpop.xlane.xlu0 %677 }
 0x252   :  { %v587_v5 = vcvt.f32.s32 %v586_v51  ;;  %vm679_vm14 = vcmp.eq.f32.partialorder %v1981_v26, %v2079_v19  ;;  %v739_v54 = vcvt.s32.f32 %v737_v59  ;;  %v1397_v51 = vld [vmem:[%s2246_s0] sm:$0xff] }
 0x253   :  { %v680_v25 = vsel %vm679_vm14, %v675_v1, inf }
 0x254   :  { %v590_v61 = vadd.s32 %v589_v23, %v587_v5  ;;  %681 = vmin.xlane.f32.xlu1 %v680_v25  ;;  %v668_v23 = vcvt.f32.s32 %v2068_v46  ;;  %v1398_v46 = vld [vmem:[%s2246_s0 + $0x8] sm:$0xff] }
 0x256   :  { %v769_v3 = vperm.slane %v590_v61, %v768_v60  ;;  %vm823_vm1 = vcmp.eq.s32.totalorder %v1763_v30, %v590_v61  ;;  %vm824_vm2 = vcmp.eq.s32.totalorder %v1766_v31, %v590_v61 }
 0x257   :  { %1365 = vmatmul.msk.f32.gmra.mxu2 %vm823_vm1, %v1451_v7  ;;  %1381 = vmatmul.msk.f32.gmra.mxu3 %vm824_vm2, %v1451_v7  ;;  %vm786_vm1 = vcmask 654912  }
 0x258   :  { %v771_v22 = vsel %vm770_vm15, %v769_v3, %v767_v56 }
 0x259   :  { %v2090_v24 = vpop.xlane.xlu2 %693  ;;  %v602_v26 = vpop.xlane.xlu1 %601 }
 0x25a   :  { %v603_v21 = vcvt.f32.s32 %v602_v26  ;;  %vm695_vm3 = vcmp.eq.f32.partialorder %v1994_v9, %v2090_v24  ;;  %v788_v26 = vadd.s32 4294967216, %v1763_v30 }
 0x25b   :  { %v696_v44 = vsel %vm695_vm3, %v691_v29, inf }
 0x25c   :  { %v606_v4 = vadd.s32 %v605_v41, %v603_v21  ;;  %697 = vmin.xlane.f32.xlu2 %v696_v44 }
 0x25e   :  { %v773_v18 = vperm.slane %v606_v4, %v772_v13  ;;  %vm825_vm5 = vcmp.eq.s32.totalorder %v1763_v30, %v606_v4  ;;  %vm826_vm6 = vcmp.eq.s32.totalorder %v1766_v31, %v606_v4 }
 0x25f   :  { %1366 = vmatmul.msk.f32.gmra.mxu2 %vm825_vm5, %v1451_v7  ;;  %1382 = vmatmul.msk.f32.gmra.mxu3 %vm826_vm6, %v1451_v7 }
 0x260   :  { %v775_v27 = vsel %vm774_vm4, %v773_v18, %v771_v22  ;;  %v669_v22 = vshll.u32 %v668_v23, 16  ;;  %vm790_vm4 = vcmask 720512   ;;  %v804_v23 = vadd.s32 4294967184, %v1763_v30 }
 0x261   :  { %v618_v28 = vpop.xlane.xlu0 %617  ;;  %v2101_v9 = vpop.xlane.xlu1 %709 }
 0x262   :  { %v619_v48 = vcvt.f32.s32 %v618_v28  ;;  %vm711_vm7 = vcmp.eq.f32.partialorder %v2011_v20, %v2101_v9  ;;  %v684_v28 = vcvt.f32.s32 %v2079_v19  ;;  %v716_v53 = vcvt.f32.s32 %v2101_v9 }
 0x263   :  { %v712_v43 = vsel %vm711_vm7, %v707_v15, inf  ;;  %vm794_vm7 = vcmask 786112  }
 0x264   :  { %v622_v10 = vadd.s32 %v621_v45, %v619_v48  ;;  %713 = vmin.xlane.f32.xlu0 %v712_v43  ;;  %v792_v48 = vadd.s32 4294967208, %v1763_v30 }
 0x266   :  { %v777_v55 = vperm.slane %v622_v10, %v776_v37  ;;  %vm827_vm9 = vcmp.eq.s32.totalorder %v1763_v30, %v622_v10  ;;  %vm828_vm10 = vcmp.eq.s32.totalorder %v1766_v31, %v622_v10  ;;  %v685_v37 = vshll.u32 %v684_v28, 16 }
 0x267   :  { %1367 = vmatmul.msk.f32.gmra.mxu2 %vm827_vm9, %v1451_v7  ;;  %1383 = vmatmul.msk.f32.gmra.mxu3 %vm828_vm10, %v1451_v7  ;;  %vm798_vm10 = vcmask 851712  }
 0x268   :  { %v779_v39 = vsel %vm778_vm8, %v777_v55, %v775_v27 }
 0x269   :  { %v2111_v40 = vpop.xlane.xlu0 %725 }
 0x26a   :  { %vm727_vm11 = vcmp.eq.f32.partialorder %v2019_v36, %v2111_v40 }
 0x26b   :  { %v728_v20 = vsel %vm727_vm11, %v723_v32, inf  ;;  %v700_v32 = vcvt.f32.s32 %v2090_v24 }
 0x26c   :  { %729 = vmin.xlane.f32.xlu1 %v728_v20 }
 0x2ad   :  { %v634_v42 = vpop.xlane.xlu2 %633 }
 0x2ae   :  { %v635_v52 = vcvt.f32.s32 %v634_v42  ;;  %v701_v42 = vshll.u32 %v700_v32, 16 }
 0x2b0   :  { %v638_v57 = vadd.s32 %v637_v34, %v635_v52  ;;  %v796_v34 = vadd.s32 4294967200, %v1763_v30 }
 0x2b2   :  { %v781_v6 = vperm.slane %v638_v57, %v780_v62  ;;  %v926_v38 = vpop.f32.mrf.mxu2  ;;  %v991_v2 = vpop.f32.mrf.mxu3  ;;  %vm829_vm13 = vcmp.eq.s32.totalorder %v1763_v30, %v638_v57  ;;  %vm830_vm14 = vcmp.eq.s32.totalorder %v1766_v31, %v638_v57 }
 0x2b3   :  { %v992_v36 = vadd.f32 %v991_v2, %v926_v38  ;;  %1368 = vmatmul.msk.f32.gmra.mxu2 %vm829_vm13, %v1451_v7  ;;  %1384 = vmatmul.msk.f32.gmra.mxu3 %vm830_vm14, %v1451_v7  ;;  %vm802_vm13 = vcmask 917312  }
 0x2b4   :  { %v783_v0 = vsel %vm782_vm12, %v781_v6, %v779_v39 }
 0x2b5   :  { %1039 = vst.msk [vmem:[%s2249_s3] sm:$0xff] %vm67_vm0, %v992_v36  ;;  %v2127_v17 = vpop.xlane.xlu2 %741  ;;  %v650_v33 = vpop.xlane.xlu1 %649  ;;  %v1106_v1 = vsub.f32 %v992_v36, %v1397_v51  ;;  %v717_v36 = vshll.u32 %v716_v53, 16 }
 0x2b6   :  { %v651_v63 = vcvt.f32.s32 %v650_v33  ;;  %vm743_vm15 = vcmp.eq.f32.partialorder %v2058_v14, %v2127_v17 }
 0x2b7   :  { %v744_v16 = vsel %vm743_vm15, %v739_v54, inf  ;;  %v1170_v11 = vmul.f32 %v1106_v1, %v1106_v1 }
 0x2b8   :  { %v654_v56 = vadd.s32 %v653_v47, %v651_v63  ;;  %745 = vmin.xlane.f32.xlu2 %v744_v16  ;;  %v732_v63 = vcvt.f32.s32 %v2111_v40 }
 0x2b9   :  { %v1186_v21 = vsel %vm67_vm0, %v1170_v11, 0.0 }
 0x2ba   :  { %v785_v60 = vperm.slane %v654_v56, %v784_v50  ;;  %v929_v5 = vpop.f32.mrf.mxu2  ;;  %v994_v25 = vpop.f32.mrf.mxu3  ;;  %vm831_vm2 = vcmp.eq.s32.totalorder %v1763_v30, %v654_v56  ;;  %vm832_vm3 = vcmp.eq.s32.totalorder %v1766_v31, %v654_v56  ;;  %v733_v1 = vshll.u32 %v732_v63, 16 }
 0x2bb   :  { %v995_v61 = vadd.f32 %v994_v25, %v929_v5  ;;  %1369 = vmatmul.msk.f32.gmra.mxu2 %vm831_vm2, %v1451_v7  ;;  %1385 = vmatmul.msk.f32.gmra.mxu3 %vm832_vm3, %v1451_v7 }
 0x2bc   :  { %v787_v14 = vsel %vm786_vm1, %v785_v60, %v783_v0  ;;  %v800_v0 = vadd.s32 4294967192, %v1763_v30  ;;  %vm806_vm1 = vcmask 982912  }
 0x2bd   :  { %1040 = vst.msk [vmem:[%s2249_s3 + $0x8] sm:$0xff] %vm67_vm0, %v995_v61  ;;  %v1107_v8 = vsub.f32 %v995_v61, %v1398_v46  ;;  %v666_v3 = vpop.xlane.xlu0 %665 }
 0x2be   :  { %v667_v29 = vcvt.f32.s32 %v666_v3 }
 0x2bf   :  { %v1171_v41 = vmul.f32 %v1107_v8, %v1107_v8 }
 0x2c0   :  { %v670_v13 = vadd.s32 %v669_v22, %v667_v29  ;;  %v748_v22 = vcvt.f32.s32 %v2127_v17 }
 0x2c1   :  { %v1187_v44 = vsel %vm67_vm0, %v1171_v41, 0.0  ;;  %v808_v41 = vadd.s32 4294967176, %v1763_v30 }
 0x2c2   :  { %v789_v4 = vperm.slane %v670_v13, %v788_v26  ;;  %v932_v12 = vpop.f32.mrf.mxu2  ;;  %v997_v35 = vpop.f32.mrf.mxu3  ;;  %vm833_vm5 = vcmp.eq.s32.totalorder %v1763_v30, %v670_v13  ;;  %vm834_vm6 = vcmp.eq.s32.totalorder %v1766_v31, %v670_v13  ;;  %v1188_v18 = vadd.f32 %v1187_v44, %v1186_v21 }
 0x2c3   :  { %v998_v27 = vadd.f32 %v997_v35, %v932_v12  ;;  %1370 = vmatmul.msk.f32.gmra.mxu2 %vm833_vm5, %v1451_v7  ;;  %1386 = vmatmul.msk.f32.gmra.mxu3 %vm834_vm6, %v1451_v7  ;;  %v749_v29 = vshll.u32 %v748_v22, 16 }
 0x2c4   :  { %v791_v15 = vsel %vm790_vm4, %v789_v4, %v787_v14  ;;  %1217 = vadd.xlane.f32.xlu0 %v1188_v18  ;;  %vm810_vm4 = vcmask 1048512  }
 0x2c5   :  { %1041 = vst.msk [vmem:[%s2249_s3 + $0x10] sm:$0xff] %vm67_vm0, %v998_v27 }
 0x2c7   :  { %v682_v45 = vpop.xlane.xlu1 %681 }
 0x2c8   :  { %v683_v43 = vcvt.f32.s32 %v682_v45 }
 0x2ca   :  { %v686_v10 = vadd.s32 %v685_v37, %v683_v43  ;;  %v935_v49 = vpop.f32.mrf.mxu2  ;;  %v1000_v55 = vpop.f32.mrf.mxu3 }
 0x2cb   :  { %v1001_v39 = vadd.f32 %v1000_v55, %v935_v49 }
 0x2cc   :  { %v793_v19 = vperm.slane %v686_v10, %v792_v48  ;;  %vm835_vm8 = vcmp.eq.s32.totalorder %v1763_v30, %v686_v10  ;;  %vm836_vm9 = vcmp.eq.s32.totalorder %v1766_v31, %v686_v10 }
 0x2cd   :  { %1042 = vst.msk [vmem:[%s2249_s3 + $0x18] sm:$0xff] %vm67_vm0, %v1001_v39  ;;  %1371 = vmatmul.msk.f32.gmra.mxu2 %vm835_vm8, %v1451_v7  ;;  %1387 = vmatmul.msk.f32.gmra.mxu3 %vm836_vm9, %v1451_v7 }
 0x2ce   :  { %v795_v20 = vsel %vm794_vm7, %v793_v19, %v791_v15 }
 0x2cf   :  { %v698_v58 = vpop.xlane.xlu2 %697 }
 0x2d0   :  { %v699_v24 = vcvt.f32.s32 %v698_v58 }
 0x2d2   :  { %v702_v62 = vadd.s32 %v701_v42, %v699_v24  ;;  %v938_v52 = vpop.f32.mrf.mxu2  ;;  %v1003_v57 = vpop.f32.mrf.mxu3 }
 0x2d3   :  { %v1004_v59 = vadd.f32 %v1003_v57, %v938_v52 }
 0x2d4   :  { %v797_v6 = vperm.slane %v702_v62, %v796_v34  ;;  %vm837_vm11 = vcmp.eq.s32.totalorder %v1763_v30, %v702_v62  ;;  %vm838_vm12 = vcmp.eq.s32.totalorder %v1766_v31, %v702_v62 }
 0x2d5   :  { %1043 = vst.msk [vmem:[%s2249_s3 + $0x20] sm:$0xff] %vm67_vm0, %v1004_v59  ;;  %1372 = vmatmul.msk.f32.gmra.mxu2 %vm837_vm11, %v1451_v7  ;;  %1388 = vmatmul.msk.f32.gmra.mxu3 %vm838_vm12, %v1451_v7 }
 0x2d6   :  { %v799_v38 = vsel %vm798_vm10, %v797_v6, %v795_v20 }
 0x2d7   :  { %v714_v2 = vpop.xlane.xlu0 %713 }
 0x2d8   :  { %v715_v9 = vcvt.f32.s32 %v714_v2 }
 0x2da   :  { %v718_v33 = vadd.s32 %v717_v36, %v715_v9  ;;  %v941_v54 = vpop.f32.mrf.mxu2  ;;  %v1006_v47 = vpop.f32.mrf.mxu3 }
 0x2db   :  { %v1007_v50 = vadd.f32 %v1006_v47, %v941_v54 }
 0x2dc   :  { %v801_v16 = vperm.slane %v718_v33, %v800_v0  ;;  %vm839_vm14 = vcmp.eq.s32.totalorder %v1763_v30, %v718_v33  ;;  %vm840_vm15 = vcmp.eq.s32.totalorder %v1766_v31, %v718_v33 }
 0x2dd   :  { %1044 = vst.msk [vmem:[%s2249_s3 + $0x28] sm:$0xff] %vm67_vm0, %v1007_v50  ;;  %1373 = vmatmul.msk.f32.gmra.mxu2 %vm839_vm14, %v1451_v7  ;;  %1389 = vmatmul.msk.f32.gmra.mxu3 %vm840_vm15, %v1451_v7 }
 0x2de   :  { %v803_v56 = vsel %vm802_vm13, %v801_v16, %v799_v38 }
 0x2df   :  { %v730_v51 = vpop.xlane.xlu1 %729 }
 0x2e0   :  { %v731_v40 = vcvt.f32.s32 %v730_v51 }
 0x2e2   :  { %v734_v60 = vadd.s32 %v733_v1, %v731_v40  ;;  %v944_v5 = vpop.f32.mrf.mxu2  ;;  %v1009_v25 = vpop.f32.mrf.mxu3 }
 0x2e3   :  { %v1010_v61 = vadd.f32 %v1009_v25, %v944_v5 }
 0x2e4   :  { %v805_v14 = vperm.slane %v734_v60, %v804_v23  ;;  %vm841_vm2 = vcmp.eq.s32.totalorder %v1763_v30, %v734_v60  ;;  %vm842_vm3 = vcmp.eq.s32.totalorder %v1766_v31, %v734_v60 }
 0x2e5   :  { %1045 = vst.msk [vmem:[%s2249_s3 + $0x30] sm:$0xff] %vm67_vm0, %v1010_v61  ;;  %1374 = vmatmul.msk.f32.gmra.mxu2 %vm841_vm2, %v1451_v7  ;;  %1390 = vmatmul.msk.f32.gmra.mxu3 %vm842_vm3, %v1451_v7 }
 0x2e6   :  { %v807_v11 = vsel %vm806_vm1, %v805_v14, %v803_v56 }
 0x2ea   :  { %v947_v46 = vpop.f32.mrf.mxu2  ;;  %v1012_v8 = vpop.f32.mrf.mxu3 }
 0x2eb   :  { %v1013_v3 = vadd.f32 %v1012_v8, %v947_v46 }
 0x2ed   :  { %1046 = vst.msk [vmem:[%s2249_s3 + $0x38] sm:$0xff] %vm67_vm0, %v1013_v3 }
 0x32b   :  { %v746_v26 = vpop.xlane.xlu2 %745 }
 0x32c   :  { %v747_v13 = vcvt.f32.s32 %v746_v26 }
 0x32e   :  { %v750_v21 = vadd.s32 %v749_v29, %v747_v13 }
 0x330   :  { %v809_v44 = vperm.slane %v750_v21, %v808_v41  ;;  %vm843_vm5 = vcmp.eq.s32.totalorder %v1763_v30, %v750_v21  ;;  %vm844_vm6 = vcmp.eq.s32.totalorder %v1766_v31, %v750_v21 }
 0x331   :  { %1375 = vmatmul.msk.f32.gmra.mxu2 %vm843_vm5, %v1451_v7  ;;  %1391 = vmatmul.msk.f32.gmra.mxu3 %vm844_vm6, %v1451_v7 }
 0x332   :  { %v811_v4 = vsel %vm810_vm4, %v809_v44, %v807_v11 }
 0x333   :  { %812 = vst [vmem:[#allocation2] sm:$0x1] %v811_v4 }
 0x334   :  { %1240 = dma.vmem_to_hbm [thread:$0]  %s1236_s1, 16, %s1238_s9, [#allocation3]  }
 0x336   :  { %v950_v17 = vpop.f32.mrf.mxu2  ;;  %v1015_v12 = vpop.f32.mrf.mxu3 }
 0x337   :  { %v1016_v35 = vadd.f32 %v1015_v12, %v950_v17  ;;  %v1218_v30 = vpop.xlane.xlu0 %1217 }
 0x338   :  { %v1219_v31 = vrot.slane %v1218_v30, 4 }
 0x339   :  { %1047 = vst.msk [vmem:[%s2249_s3 + $0x40] sm:$0xff] %vm67_vm0, %v1016_v35 }
 0x33a   :  { %v1220_v7 = vadd.f32 %v1219_v31, %v1218_v30 }
 0x33c   :  { %v1221_v18 = vrot.slane %v1220_v7, 2 }
 0x33e   :  { %v953_v27 = vpop.f32.mrf.mxu2  ;;  %v1018_v28 = vpop.f32.mrf.mxu3  ;;  %v1222_v15 = vadd.f32 %v1221_v18, %v1220_v7 }
 0x33f   :  { %v1019_v45 = vadd.f32 %v1018_v28, %v953_v27 }
 0x340   :  { %v1223_v37 = vrot.slane %v1222_v15, 1 }
 0x341   :  { %1048 = vst.msk [vmem:[%s2249_s3 + $0x48] sm:$0xff] %vm67_vm0, %v1019_v45 }
 0x342   :  { %v1224_v48 = vadd.f32 %v1223_v37, %v1222_v15 }
 0x344   :  { %1392 = vpush %v1224_v48 }
 0x346   :  { %v956_v43 = vpop.f32.mrf.mxu2  ;;  %v1021_v10 = vpop.f32.mrf.mxu3 }
 0x347   :  { %v1022_v49 = vadd.f32 %v1021_v10, %v956_v43 }
 0x349   :  { %1049 = vst.msk [vmem:[%s2249_s3 + $0x50] sm:$0xff] %vm67_vm0, %v1022_v49 }
 0x350   :  { %v959_v55 = vpop.f32.mrf.mxu2  ;;  %v1024_v39 = vpop.f32.mrf.mxu3 }
 0x351   :  { %v1025_v32 = vadd.f32 %v1024_v39, %v959_v55 }
 0x353   :  { %1050 = vst.msk [vmem:[%s2249_s3 + $0x58] sm:$0xff] %vm67_vm0, %v1025_v32 }
 0x358   :  { %v962_v19 = vpop.f32.mrf.mxu2  ;;  %v1027_v20 = vpop.f32.mrf.mxu3 }
 0x359   :  { %v1028_v58 = vadd.f32 %v1027_v20, %v962_v19 }
 0x35b   :  { %1051 = vst.msk [vmem:[%s2249_s3 + $0x60] sm:$0xff] %vm67_vm0, %v1028_v58 }
 0x360   :  { %v965_v42 = vpop.f32.mrf.mxu2  ;;  %v1030_v34 = vpop.f32.mrf.mxu3 }
 0x361   :  { %v1031_v24 = vadd.f32 %v1030_v34, %v965_v42 }
 0x363   :  { %1052 = vst.msk [vmem:[%s2249_s3 + $0x68] sm:$0xff] %vm67_vm0, %v1031_v24 }
 0x368   :  { %v968_v62 = vpop.f32.mrf.mxu2  ;;  %v1033_v52 = vpop.f32.mrf.mxu3 }
 0x369   :  { %v1034_v57 = vadd.f32 %v1033_v52, %v968_v62 }
 0x36b   :  { %1053 = vst.msk [vmem:[%s2249_s3 + $0x70] sm:$0xff] %vm67_vm0, %v1034_v57 }
 0x375   :  { %s1393_s27 = spop %1392 }
 0x376   :  { %v1226_v59 = vstv %s1393_s27 }
 0x377   :  { %1227 = vst [vmem:[#allocation4] sm:$0x1] %v1226_v59 }
 0x378   :  { %1251 = dma.vmem_to_hbm [thread:$0]  %s1247_s23, 16, %s1249_s26, [#allocation5]  }
 0x3b4   :  { %v971_v53 = vpop.f32.mrf.mxu2  ;;  %v1036_v6 = vpop.f32.mrf.mxu3 }
 0x3b5   :  { %v1037_v38 = vadd.f32 %v1036_v6, %v971_v53 }
 0x3b7   :  { %1054 = vst.msk [vmem:[%s2249_s3 + $0x78] sm:$0xff] %vm67_vm0, %v1037_v38 }
 0x3b8   :  { %1447 = dma.done.wait [#allocation3], 16  }
 0x3b9   :  { %1448 = vsyncadd [#allocation3], 4294967280 }
 0x3ba   :  { %1449 = dma.done.wait [#allocation5], 16  }
 0x3bb   :  { %1450 = vsyncadd [#allocation5], 4294967280 }
 0x3bc   :  { %1262 = vsyncpa [#allocation3], 1 }
 0x3bd   :  { %1263 = vsyncpa [#allocation5], 1 }

</bundles_post_ra>
